<compile_context>
chip_gen: v7x
topology: tpu7x:2x2x1
jax: 0.10.0
libtpu: 0.0.40
codegen_flags: <defaults>
</compile_context>

<pallas_src>
import numpy as np
import jax
import jax.numpy as jnp
from jax.experimental import pallas as pl
from jax.experimental.pallas import tpu as pltpu


# ----------------------------------------------------------------------------
# Activations
# ----------------------------------------------------------------------------
def _softplus_beta100_fast(x):
    # Exact identity for nn.Softplus(beta=100).  PyTorch's threshold branch
    # (y = x when 100*x > 20) only guards overflow; the dropped residual term
    # is < 2e-11 there, far inside the 1e-4 tolerance.
    return jnp.maximum(x, 0.0) + 0.01 * jnp.log1p(jnp.exp(-100.0 * jnp.abs(x)))


def _softplus_beta100_ref(x):
    # Bit-faithful PyTorch nn.Softplus(beta=100, threshold=20) for the reference.
    z = 100.0 * x
    sp = (jnp.maximum(z, 0.0) + jnp.log1p(jnp.exp(-jnp.abs(z)))) / 100.0
    return jnp.where(z > 20.0, x, sp)


# ----------------------------------------------------------------------------
# Kernel
# ----------------------------------------------------------------------------
def make_deformer_kernel(layer_kinds):
    """Fused feature-major MLP kernel.

    Kernel refs: coords (1, d_in, tile_n), then per layer
      kind 'cond'  -> (W_x (out, x_dim), cond_proj (1, out, 1))   cond_proj = c @ W_cond^T + b
      kind 'skip'  -> (W_x (out, x_dim), W_coords (out, d_in), b (out, 1))
      kind 'plain' -> (W (out, in), b (out, 1))
    and finally out_ref (1, d_out, tile_n).
    Activations x are (feat, tile_n): the point axis is the 128-lane axis.
    """
    num_lin = len(layer_kinds)

    def kernel(coords_ref, *refs):
        out_ref = refs[-1]
        wrefs = refs[:-1]
        coords = coords_ref[0]                        # (d_in, tile_n)
        x = coords
        idx = 0
        for l, kind in enumerate(layer_kinds):
            if kind == "cond":
                w_x = wrefs[idx][...]                 # (out, x_dim)
                cproj = wrefs[idx + 1][0]             # (out, 1): cond contribution + bias
                idx += 2
                x = jnp.dot(w_x, x, preferred_element_type=jnp.float32) + cproj
            elif kind == "skip":
                w_x = wrefs[idx][...]                 # (out, x_dim)
                w_c = wrefs[idx + 1][...]             # (out, d_in)
                b = wrefs[idx + 2][...]               # (out, 1)
                idx += 3
                x = (jnp.dot(w_x, x, preferred_element_type=jnp.float32)
                     + jnp.dot(w_c, coords, preferred_element_type=jnp.float32)
                     + b)
            else:
                w = wrefs[idx][...]                   # (out, in)
                b = wrefs[idx + 1][...]               # (out, 1)
                idx += 2
                x = jnp.dot(w, x, preferred_element_type=jnp.float32) + b
            if l < num_lin - 1:
                x = _softplus_beta100_fast(x)
        out_ref[0] = x                                # lane-dense store (d_out, tile_n)

    return kernel


# ----------------------------------------------------------------------------
# Parameter construction (mirrors Deformer.__init__, multires=0,
# geometric_init=True, weight_norm=True -> identity at init)
# ----------------------------------------------------------------------------
def init_deformer_params(key, d_in, d_out, d_hidden, n_layers, cond_dim,
                         skip_in=(4,), cond_in=(0,), bias=1.0,
                         inside_outside=False):
    # TODO(synk): multires > 0 positional-embedding path not implemented (multires=0 only).
    dims = [d_in] + [d_hidden] * n_layers + [d_out]
    num_layers = len(dims)
    params = []
    for l in range(num_layers - 1):
        out_dim = dims[l + 1] - dims[0] if (l + 1) in skip_in else dims[l + 1]
        in_dim = dims[l] + cond_dim if l in cond_in else dims[l]
        key, wkey = jax.random.split(key)
        if l == num_layers - 2:
            mean = np.sqrt(np.pi) / np.sqrt(dims[l])
            if inside_outside:
                mean = -mean
            W = mean + 1e-4 * jax.random.normal(wkey, (out_dim, in_dim), jnp.float32)
            b = jnp.full((out_dim,), bias if inside_outside else -bias, jnp.float32)
        else:
            std = np.sqrt(2.0) / np.sqrt(out_dim)
            W = std * jax.random.normal(wkey, (out_dim, in_dim), jnp.float32)
            b = jnp.zeros((out_dim,), jnp.float32)
        # weight_norm reparam is the identity at init (g initialised to ||v||_row).
        params.append((W, b))                         # W: (out, in) like nn.Linear.weight
    return params


def _fold_params_for_kernel(params, c, cond_in, skip_in, d_coords):
    """Split per-layer weights so the kernel never concatenates, and fold the
    conditioning (and its bias) of cond layers into a per-batch (out, 1) column."""
    cond_in = set(cond_in)
    skip_in = set(skip_in)
    assert not (cond_in & skip_in), "a layer cannot be in both cond_in and skip_in"
    c = c.astype(jnp.float32)
    cond_dim = c.shape[1]
    kinds, flat, per_batch = [], [], set()
    for l, (W, b) in enumerate(params):
        W = W.astype(jnp.float32)                     # (out, in_total)
        b = b.astype(jnp.float32)                     # (out,)
        if l in cond_in:
            x_dim = W.shape[1] - cond_dim
            W_x = W[:, :x_dim]
            cond_proj = (c @ W[:, x_dim:].T + b)[:, :, None]   # (B, out, 1)
            flat += [W_x, cond_proj]
            per_batch.add(len(flat) - 1)
            kinds.append("cond")
        elif l in skip_in:
            x_dim = W.shape[1] - d_coords
            flat += [W[:, :x_dim], W[:, x_dim:], b[:, None]]
            kinds.append("skip")
        else:
            flat += [W, b[:, None]]
            kinds.append("plain")
    return tuple(kinds), flat, per_batch


# ----------------------------------------------------------------------------
# Pallas wrapper
# ----------------------------------------------------------------------------
def deformer_forward(p, c, params, *, cond_in=(0,), skip_in=(4,),
                     tile_n=8192, vmem_limit_bytes=32 * 1024 * 1024):
    """p: (B, n_pts, d_in) float32; c: (B, cond_dim) float32 -> (B, n_pts, d_out)."""
    B, n_pts, d_in = p.shape
    tile_n = min(tile_n, n_pts)
    assert n_pts % tile_n == 0, "tile_n must divide n_pts"
    assert tile_n == n_pts or tile_n % 128 == 0, "partial tiles must be lane-aligned"
    tiles_per_batch = n_pts // tile_n
    d_out = params[-1][0].shape[0]
    N = B * n_pts

    # Feature-major (lane-dense) layout: points on the 128-lane axis.
    coords_fm = jnp.transpose(p.astype(jnp.float32), (0, 2, 1))   # (B, d_in, n_pts)

    kinds, flat, per_batch = _fold_params_for_kernel(params, c, cond_in, skip_in, d_in)

    in_specs = [pl.BlockSpec((1, d_in, tile_n), lambda b, j: (b, 0, j))]
    args = [coords_fm]
    for idx, a in enumerate(flat):
        args.append(a)
        if idx in per_batch:
            # (B, out, 1) -> per-batch block; index_map picks the batch row.
            in_specs.append(pl.BlockSpec((1,) + a.shape[1:], lambda b, j: (b, 0, 0)))
        else:
            # Small weight/bias: single full block, resident in VMEM across steps.
            in_specs.append(pl.BlockSpec(a.shape, lambda b, j: (0, 0)))

    # Advisory cost estimate for XLA scheduling of the surrounding graph.
    flops = sum(2 * N * a.shape[0] * a.shape[1]
                for a in flat if a.ndim == 2 and a.shape[1] > 1)
    transcendentals = 2 * N * sum(W.shape[0] for W, _ in params[:-1])  # exp + log1p
    bytes_accessed = 4 * (coords_fm.size + N * d_out
                          + sum(int(np.prod(a.shape)) for a in flat))

    out_fm = pl.pallas_call(
        make_deformer_kernel(kinds),
        out_shape=jax.ShapeDtypeStruct((B, d_out, n_pts), jnp.float32),
        grid_spec=pltpu.PrefetchScalarGridSpec(
            num_scalar_prefetch=0,
            grid=(B, tiles_per_batch),
            in_specs=in_specs,
            out_specs=pl.BlockSpec((1, d_out, tile_n), lambda b, j: (b, 0, j)),
        ),
        compiler_params=pltpu.CompilerParams(
            dimension_semantics=("parallel", "parallel"),
            vmem_limit_bytes=vmem_limit_bytes),
        cost_estimate=pl.CostEstimate(
            flops=int(flops),
            transcendentals=int(transcendentals),
            bytes_accessed=int(bytes_accessed)),
    )(*args)

    return jnp.transpose(out_fm, (0, 2, 1))           # (B, n_pts, d_out)


# ----------------------------------------------------------------------------
# Pure-JAX reference (mirrors the PyTorch forward exactly: concat form,
# thresholded softplus, row-major layout)
# ----------------------------------------------------------------------------
def deformer_reference(p, c, params, *, cond_in=(0,), skip_in=(4,)):
    B, n_pts, d_in = p.shape
    coords = p.reshape(-1, d_in).astype(jnp.float32)
    cond_dim = c.shape[1]
    cond = jnp.broadcast_to(c[:, None, :].astype(jnp.float32),
                            (B, n_pts, cond_dim)).reshape(-1, cond_dim)
    x = coords
    num_lin = len(params)
    for l, (W, b) in enumerate(params):
        if l in cond_in:
            x = jnp.concatenate([x, cond], axis=1)
        if l in skip_in:
            x = jnp.concatenate([x, coords], axis=1)
        x = x @ W.T + b
        if l < num_lin - 1:
            x = _softplus_beta100_ref(x)
    return x.reshape(B, n_pts, -1)


if __name__ == "__main__":
    # Small config consistent with the module:
    #   d_in=3, d_out=3, d_hidden=32, n_layers=5 -> dims=[3,32,32,32,32,32,3],
    #   skip_in=[4], cond_in=[0], cond_dim=29, multires=0.
    d_in, d_out, d_hidden, n_layers, cond_dim = 3, 3, 32, 5, 29
    batch, n_pts = 2, 256

    key = jax.random.PRNGKey(0)
    k_param, k_p, k_c = jax.random.split(key, 3)

    params = init_deformer_params(
        k_param, d_in, d_out, d_hidden, n_layers, cond_dim,
        skip_in=(4,), cond_in=(0,), bias=1.0)

    p = jax.random.normal(k_p, (batch, n_pts, d_in), jnp.float32)
    c = jax.random.normal(k_c, (batch, cond_dim), jnp.float32)

    out = deformer_forward(p, c, params, cond_in=(0,), skip_in=(4,))
    out = jax.block_until_ready(out)

    ref = deformer_reference(p, c, params, cond_in=(0,), skip_in=(4,))
    assert out.shape == (batch, n_pts, d_out)
    np.testing.assert_allclose(np.asarray(out), np.asarray(ref), rtol=1e-4, atol=1e-4)

    print("KERNEL_OK")
</pallas_src>

<mosaic_0001>
module attributes {stable_mosaic.version = 11 : i64} {
  func.func @kernel(%arg0: i32, %arg1: i32, %arg2: memref<1x3x256xf32, #tpu.memory_space<vmem>>, %arg3: memref<32x3xf32, #tpu.memory_space<vmem>>, %arg4: memref<1x32x1xf32, #tpu.memory_space<vmem>>, %arg5: memref<32x32xf32, #tpu.memory_space<vmem>>, %arg6: memref<32x1xf32, #tpu.memory_space<vmem>>, %arg7: memref<32x32xf32, #tpu.memory_space<vmem>>, %arg8: memref<32x1xf32, #tpu.memory_space<vmem>>, %arg9: memref<29x32xf32, #tpu.memory_space<vmem>>, %arg10: memref<29x1xf32, #tpu.memory_space<vmem>>, %arg11: memref<32x29xf32, #tpu.memory_space<vmem>>, %arg12: memref<32x3xf32, #tpu.memory_space<vmem>>, %arg13: memref<32x1xf32, #tpu.memory_space<vmem>>, %arg14: memref<3x32xf32, #tpu.memory_space<vmem>>, %arg15: memref<3x1xf32, #tpu.memory_space<vmem>>, %arg16: memref<1x3x256xf32, #tpu.memory_space<vmem>>) attributes {dimension_semantics = [#tpu.dimension_semantics<parallel>, #tpu.dimension_semantics<parallel>], iteration_bounds = array<i64: 2, 1>, scalar_prefetch = 0 : i64, scratch_operands = 0 : i64, tpu.core_type = #tpu.core_type<tc>, window_params = [{transform_indices = @transform_0, window_bounds = array<i64: 1, 3, 256>}, {pipeline_mode = #tpu.pipeline_mode<synchronous>, transform_indices = @transform_1, window_bounds = array<i64: 32, 3>}, {transform_indices = @transform_2, window_bounds = array<i64: 1, 32, 1>}, {pipeline_mode = #tpu.pipeline_mode<synchronous>, transform_indices = @transform_3, window_bounds = array<i64: 32, 32>}, {pipeline_mode = #tpu.pipeline_mode<synchronous>, transform_indices = @transform_4, window_bounds = array<i64: 32, 1>}, {pipeline_mode = #tpu.pipeline_mode<synchronous>, transform_indices = @transform_5, window_bounds = array<i64: 32, 32>}, {pipeline_mode = #tpu.pipeline_mode<synchronous>, transform_indices = @transform_6, window_bounds = array<i64: 32, 1>}, {pipeline_mode = #tpu.pipeline_mode<synchronous>, transform_indices = @transform_7, window_bounds = array<i64: 29, 32>}, {pipeline_mode = #tpu.pipeline_mode<synchronous>, transform_indices = @transform_8, window_bounds = array<i64: 29, 1>}, {pipeline_mode = #tpu.pipeline_mode<synchronous>, transform_indices = @transform_9, window_bounds = array<i64: 32, 29>}, {pipeline_mode = #tpu.pipeline_mode<synchronous>, transform_indices = @transform_10, window_bounds = array<i64: 32, 3>}, {pipeline_mode = #tpu.pipeline_mode<synchronous>, transform_indices = @transform_11, window_bounds = array<i64: 32, 1>}, {pipeline_mode = #tpu.pipeline_mode<synchronous>, transform_indices = @transform_12, window_bounds = array<i64: 3, 32>}, {pipeline_mode = #tpu.pipeline_mode<synchronous>, transform_indices = @transform_13, window_bounds = array<i64: 3, 1>}, {transform_indices = @transform_14, window_bounds = array<i64: 1, 3, 256>}]} {
    %c0 = arith.constant 0 : index
    %c0_0 = arith.constant 0 : index
    %c0_1 = arith.constant 0 : index
    %0 = vector.load %arg2[%c0, %c0_0, %c0_1] : memref<1x3x256xf32, #tpu.memory_space<vmem>>, vector<1x3x256xf32>
    %1 = vector.shape_cast %0 : vector<1x3x256xf32> to vector<3x256xf32>
    %c0_2 = arith.constant 0 : index
    %c0_3 = arith.constant 0 : index
    %2 = vector.load %arg3[%c0_2, %c0_3] : memref<32x3xf32, #tpu.memory_space<vmem>>, vector<32x3xf32>
    %c0_4 = arith.constant 0 : index
    %c0_5 = arith.constant 0 : index
    %c0_6 = arith.constant 0 : index
    %3 = vector.load %arg4[%c0_4, %c0_5, %c0_6] : memref<1x32x1xf32, #tpu.memory_space<vmem>>, vector<1x32x1xf32>
    %4 = vector.shape_cast %3 : vector<1x32x1xf32> to vector<32x1xf32>
    %cst = arith.constant dense<0.000000e+00> : vector<32x256xf32>
    %5 = tpu.matmul %2, %1, %cst {dimension_numbers = #tpu.dot_dimension_numbers<[1], [0], [0], [1], [0, 0, 1, 1], [], []>} : vector<32x3xf32>, vector<3x256xf32>, vector<32x256xf32> -> vector<32x256xf32>
    %6 = vector.broadcast %4 : vector<32x1xf32> to vector<32x256xf32>
    %7 = arith.addf %5, %6 : vector<32x256xf32>
    %cst_7 = arith.constant 0.000000e+00 : f32
    %8 = vector.broadcast %cst_7 : f32 to vector<32x256xf32>
    %9 = arith.maximumf %7, %8 : vector<32x256xf32>
    %10 = math.absf %7 : vector<32x256xf32>
    %cst_8 = arith.constant -1.000000e+02 : f32
    %11 = vector.broadcast %cst_8 : f32 to vector<32x256xf32>
    %12 = arith.mulf %11, %10 : vector<32x256xf32>
    %13 = math.exp %12 : vector<32x256xf32>
    %14 = math.log1p %13 : vector<32x256xf32>
    %cst_9 = arith.constant 0.00999999977 : f32
    %15 = vector.broadcast %cst_9 : f32 to vector<32x256xf32>
    %16 = arith.mulf %15, %14 : vector<32x256xf32>
    %17 = arith.addf %9, %16 : vector<32x256xf32>
    %c0_10 = arith.constant 0 : index
    %c0_11 = arith.constant 0 : index
    %18 = vector.load %arg5[%c0_10, %c0_11] : memref<32x32xf32, #tpu.memory_space<vmem>>, vector<32x32xf32>
    %c0_12 = arith.constant 0 : index
    %c0_13 = arith.constant 0 : index
    %19 = vector.load %arg6[%c0_12, %c0_13] : memref<32x1xf32, #tpu.memory_space<vmem>>, vector<32x1xf32>
    %cst_14 = arith.constant dense<0.000000e+00> : vector<32x256xf32>
    %20 = tpu.matmul %18, %17, %cst_14 {dimension_numbers = #tpu.dot_dimension_numbers<[1], [0], [0], [1], [0, 0, 1, 1], [], []>} : vector<32x32xf32>, vector<32x256xf32>, vector<32x256xf32> -> vector<32x256xf32>
    %21 = vector.broadcast %19 : vector<32x1xf32> to vector<32x256xf32>
    %22 = arith.addf %20, %21 : vector<32x256xf32>
    %cst_15 = arith.constant 0.000000e+00 : f32
    %23 = vector.broadcast %cst_15 : f32 to vector<32x256xf32>
    %24 = arith.maximumf %22, %23 : vector<32x256xf32>
    %25 = math.absf %22 : vector<32x256xf32>
    %cst_16 = arith.constant -1.000000e+02 : f32
    %26 = vector.broadcast %cst_16 : f32 to vector<32x256xf32>
    %27 = arith.mulf %26, %25 : vector<32x256xf32>
    %28 = math.exp %27 : vector<32x256xf32>
    %29 = math.log1p %28 : vector<32x256xf32>
    %cst_17 = arith.constant 0.00999999977 : f32
    %30 = vector.broadcast %cst_17 : f32 to vector<32x256xf32>
    %31 = arith.mulf %30, %29 : vector<32x256xf32>
    %32 = arith.addf %24, %31 : vector<32x256xf32>
    %c0_18 = arith.constant 0 : index
    %c0_19 = arith.constant 0 : index
    %33 = vector.load %arg7[%c0_18, %c0_19] : memref<32x32xf32, #tpu.memory_space<vmem>>, vector<32x32xf32>
    %c0_20 = arith.constant 0 : index
    %c0_21 = arith.constant 0 : index
    %34 = vector.load %arg8[%c0_20, %c0_21] : memref<32x1xf32, #tpu.memory_space<vmem>>, vector<32x1xf32>
    %cst_22 = arith.constant dense<0.000000e+00> : vector<32x256xf32>
    %35 = tpu.matmul %33, %32, %cst_22 {dimension_numbers = #tpu.dot_dimension_numbers<[1], [0], [0], [1], [0, 0, 1, 1], [], []>} : vector<32x32xf32>, vector<32x256xf32>, vector<32x256xf32> -> vector<32x256xf32>
    %36 = vector.broadcast %34 : vector<32x1xf32> to vector<32x256xf32>
    %37 = arith.addf %35, %36 : vector<32x256xf32>
    %cst_23 = arith.constant 0.000000e+00 : f32
    %38 = vector.broadcast %cst_23 : f32 to vector<32x256xf32>
    %39 = arith.maximumf %37, %38 : vector<32x256xf32>
    %40 = math.absf %37 : vector<32x256xf32>
    %cst_24 = arith.constant -1.000000e+02 : f32
    %41 = vector.broadcast %cst_24 : f32 to vector<32x256xf32>
    %42 = arith.mulf %41, %40 : vector<32x256xf32>
    %43 = math.exp %42 : vector<32x256xf32>
    %44 = math.log1p %43 : vector<32x256xf32>
    %cst_25 = arith.constant 0.00999999977 : f32
    %45 = vector.broadcast %cst_25 : f32 to vector<32x256xf32>
    %46 = arith.mulf %45, %44 : vector<32x256xf32>
    %47 = arith.addf %39, %46 : vector<32x256xf32>
    %c0_26 = arith.constant 0 : index
    %c0_27 = arith.constant 0 : index
    %48 = vector.load %arg9[%c0_26, %c0_27] : memref<29x32xf32, #tpu.memory_space<vmem>>, vector<29x32xf32>
    %c0_28 = arith.constant 0 : index
    %c0_29 = arith.constant 0 : index
    %49 = vector.load %arg10[%c0_28, %c0_29] : memref<29x1xf32, #tpu.memory_space<vmem>>, vector<29x1xf32>
    %cst_30 = arith.constant dense<0.000000e+00> : vector<29x256xf32>
    %50 = tpu.matmul %48, %47, %cst_30 {dimension_numbers = #tpu.dot_dimension_numbers<[1], [0], [0], [1], [0, 0, 1, 1], [], []>} : vector<29x32xf32>, vector<32x256xf32>, vector<29x256xf32> -> vector<29x256xf32>
    %51 = vector.broadcast %49 : vector<29x1xf32> to vector<29x256xf32>
    %52 = arith.addf %50, %51 : vector<29x256xf32>
    %cst_31 = arith.constant 0.000000e+00 : f32
    %53 = vector.broadcast %cst_31 : f32 to vector<29x256xf32>
    %54 = arith.maximumf %52, %53 : vector<29x256xf32>
    %55 = math.absf %52 : vector<29x256xf32>
    %cst_32 = arith.constant -1.000000e+02 : f32
    %56 = vector.broadcast %cst_32 : f32 to vector<29x256xf32>
    %57 = arith.mulf %56, %55 : vector<29x256xf32>
    %58 = math.exp %57 : vector<29x256xf32>
    %59 = math.log1p %58 : vector<29x256xf32>
    %cst_33 = arith.constant 0.00999999977 : f32
    %60 = vector.broadcast %cst_33 : f32 to vector<29x256xf32>
    %61 = arith.mulf %60, %59 : vector<29x256xf32>
    %62 = arith.addf %54, %61 : vector<29x256xf32>
    %c0_34 = arith.constant 0 : index
    %c0_35 = arith.constant 0 : index
    %63 = vector.load %arg11[%c0_34, %c0_35] : memref<32x29xf32, #tpu.memory_space<vmem>>, vector<32x29xf32>
    %c0_36 = arith.constant 0 : index
    %c0_37 = arith.constant 0 : index
    %64 = vector.load %arg12[%c0_36, %c0_37] : memref<32x3xf32, #tpu.memory_space<vmem>>, vector<32x3xf32>
    %c0_38 = arith.constant 0 : index
    %c0_39 = arith.constant 0 : index
    %65 = vector.load %arg13[%c0_38, %c0_39] : memref<32x1xf32, #tpu.memory_space<vmem>>, vector<32x1xf32>
    %cst_40 = arith.constant dense<0.000000e+00> : vector<32x256xf32>
    %66 = tpu.matmul %63, %62, %cst_40 {dimension_numbers = #tpu.dot_dimension_numbers<[1], [0], [0], [1], [0, 0, 1, 1], [], []>} : vector<32x29xf32>, vector<29x256xf32>, vector<32x256xf32> -> vector<32x256xf32>
    %cst_41 = arith.constant dense<0.000000e+00> : vector<32x256xf32>
    %67 = tpu.matmul %64, %1, %cst_41 {dimension_numbers = #tpu.dot_dimension_numbers<[1], [0], [0], [1], [0, 0, 1, 1], [], []>} : vector<32x3xf32>, vector<3x256xf32>, vector<32x256xf32> -> vector<32x256xf32>
    %68 = arith.addf %66, %67 : vector<32x256xf32>
    %69 = vector.broadcast %65 : vector<32x1xf32> to vector<32x256xf32>
    %70 = arith.addf %68, %69 : vector<32x256xf32>
    %cst_42 = arith.constant 0.000000e+00 : f32
    %71 = vector.broadcast %cst_42 : f32 to vector<32x256xf32>
    %72 = arith.maximumf %70, %71 : vector<32x256xf32>
    %73 = math.absf %70 : vector<32x256xf32>
    %cst_43 = arith.constant -1.000000e+02 : f32
    %74 = vector.broadcast %cst_43 : f32 to vector<32x256xf32>
    %75 = arith.mulf %74, %73 : vector<32x256xf32>
    %76 = math.exp %75 : vector<32x256xf32>
    %77 = math.log1p %76 : vector<32x256xf32>
    %cst_44 = arith.constant 0.00999999977 : f32
    %78 = vector.broadcast %cst_44 : f32 to vector<32x256xf32>
    %79 = arith.mulf %78, %77 : vector<32x256xf32>
    %80 = arith.addf %72, %79 : vector<32x256xf32>
    %c0_45 = arith.constant 0 : index
    %c0_46 = arith.constant 0 : index
    %81 = vector.load %arg14[%c0_45, %c0_46] : memref<3x32xf32, #tpu.memory_space<vmem>>, vector<3x32xf32>
    %c0_47 = arith.constant 0 : index
    %c0_48 = arith.constant 0 : index
    %82 = vector.load %arg15[%c0_47, %c0_48] : memref<3x1xf32, #tpu.memory_space<vmem>>, vector<3x1xf32>
    %cst_49 = arith.constant dense<0.000000e+00> : vector<3x256xf32>
    %83 = tpu.matmul %81, %80, %cst_49 {dimension_numbers = #tpu.dot_dimension_numbers<[1], [0], [0], [1], [0, 0, 1, 1], [], []>} : vector<3x32xf32>, vector<32x256xf32>, vector<3x256xf32> -> vector<3x256xf32>
    %84 = vector.broadcast %82 : vector<3x1xf32> to vector<3x256xf32>
    %85 = arith.addf %83, %84 : vector<3x256xf32>
    %c0_50 = arith.constant 0 : index
    %c0_51 = arith.constant 0 : index
    %c0_52 = arith.constant 0 : index
    %86 = vector.load %arg16[%c0_50, %c0_51, %c0_52] : memref<1x3x256xf32, #tpu.memory_space<vmem>>, vector<1x3x256xf32>
    %87 = vector.shape_cast %86 : vector<1x3x256xf32> to vector<3x256xf32>
    %88 = vector.shape_cast %85 : vector<3x256xf32> to vector<1x3x256xf32>
    tpu.vector_store %arg16[%c0_50, %c0_51, %c0_52], %88 {strides = array<i32>} : memref<1x3x256xf32, #tpu.memory_space<vmem>>, vector<1x3x256xf32>,
    return
  }
  func.func @transform_0(%arg0: i32, %arg1: i32) -> (i32, i32, i32) {
    %c0_i32 = arith.constant 0 : i32
    %c0_i32_0 = arith.constant 0 : i32
    return %arg0, %c0_i32, %arg1 : i32, i32, i32
  }
  func.func @transform_1(%arg0: i32, %arg1: i32) -> (i32, i32) {
    %c0_i32 = arith.constant 0 : i32
    %c0_i32_0 = arith.constant 0 : i32
    %c0_i32_1 = arith.constant 0 : i32
    return %c0_i32, %c0_i32_0 : i32, i32
  }
  func.func @transform_2(%arg0: i32, %arg1: i32) -> (i32, i32, i32) {
    %c0_i32 = arith.constant 0 : i32
    %c0_i32_0 = arith.constant 0 : i32
    %c0_i32_1 = arith.constant 0 : i32
    return %arg0, %c0_i32, %c0_i32_0 : i32, i32, i32
  }
  func.func @transform_3(%arg0: i32, %arg1: i32) -> (i32, i32) {
    %c0_i32 = arith.constant 0 : i32
    %c0_i32_0 = arith.constant 0 : i32
    %c0_i32_1 = arith.constant 0 : i32
    return %c0_i32, %c0_i32_0 : i32, i32
  }
  func.func @transform_4(%arg0: i32, %arg1: i32) -> (i32, i32) {
    %c0_i32 = arith.constant 0 : i32
    %c0_i32_0 = arith.constant 0 : i32
    %c0_i32_1 = arith.constant 0 : i32
    return %c0_i32, %c0_i32_0 : i32, i32
  }
  func.func @transform_5(%arg0: i32, %arg1: i32) -> (i32, i32) {
    %c0_i32 = arith.constant 0 : i32
    %c0_i32_0 = arith.constant 0 : i32
    %c0_i32_1 = arith.constant 0 : i32
    return %c0_i32, %c0_i32_0 : i32, i32
  }
  func.func @transform_6(%arg0: i32, %arg1: i32) -> (i32, i32) {
    %c0_i32 = arith.constant 0 : i32
    %c0_i32_0 = arith.constant 0 : i32
    %c0_i32_1 = arith.constant 0 : i32
    return %c0_i32, %c0_i32_0 : i32, i32
  }
  func.func @transform_7(%arg0: i32, %arg1: i32) -> (i32, i32) {
    %c0_i32 = arith.constant 0 : i32
    %c0_i32_0 = arith.constant 0 : i32
    %c0_i32_1 = arith.constant 0 : i32
    return %c0_i32, %c0_i32_0 : i32, i32
  }
  func.func @transform_8(%arg0: i32, %arg1: i32) -> (i32, i32) {
    %c0_i32 = arith.constant 0 : i32
    %c0_i32_0 = arith.constant 0 : i32
    %c0_i32_1 = arith.constant 0 : i32
    return %c0_i32, %c0_i32_0 : i32, i32
  }
  func.func @transform_9(%arg0: i32, %arg1: i32) -> (i32, i32) {
    %c0_i32 = arith.constant 0 : i32
    %c0_i32_0 = arith.constant 0 : i32
    %c0_i32_1 = arith.constant 0 : i32
    return %c0_i32, %c0_i32_0 : i32, i32
  }
  func.func @transform_10(%arg0: i32, %arg1: i32) -> (i32, i32) {
    %c0_i32 = arith.constant 0 : i32
    %c0_i32_0 = arith.constant 0 : i32
    %c0_i32_1 = arith.constant 0 : i32
    return %c0_i32, %c0_i32_0 : i32, i32
  }
  func.func @transform_11(%arg0: i32, %arg1: i32) -> (i32, i32) {
    %c0_i32 = arith.constant 0 : i32
    %c0_i32_0 = arith.constant 0 : i32
    %c0_i32_1 = arith.constant 0 : i32
    return %c0_i32, %c0_i32_0 : i32, i32
  }
  func.func @transform_12(%arg0: i32, %arg1: i32) -> (i32, i32) {
    %c0_i32 = arith.constant 0 : i32
    %c0_i32_0 = arith.constant 0 : i32
    %c0_i32_1 = arith.constant 0 : i32
    return %c0_i32, %c0_i32_0 : i32, i32
  }
  func.func @transform_13(%arg0: i32, %arg1: i32) -> (i32, i32) {
    %c0_i32 = arith.constant 0 : i32
    %c0_i32_0 = arith.constant 0 : i32
    %c0_i32_1 = arith.constant 0 : i32
    return %c0_i32, %c0_i32_0 : i32, i32
  }
  func.func @transform_14(%arg0: i32, %arg1: i32) -> (i32, i32, i32) {
    %c0_i32 = arith.constant 0 : i32
    %c0_i32_0 = arith.constant 0 : i32
    return %arg0, %c0_i32, %arg1 : i32, i32, i32
  }
}

</mosaic_0001>

<bundles_post_ra>
// kernel: tpu_custom_call.1
= control target key start
LH: loop header
LB: loop body
LE: loop exit
PB: predicated region body
PF: predicated region fallthrough
CT: control target
= control target key end

     0   :  { %s2517_s29 = smov 0   ;;  %s2519_s30 = smov 0   ;;  %s3079_s0 = inlined_call_operand.vmem [shape: f32[2,3,256], index: 0, kind: input, shape index: {}]   ;;  %s3080_s1 = inlined_call_operand.vmem [shape: f32[32,3], index: 1, kind: input, shape index: {}]   ;;  %s3081_s2 = inlined_call_operand.vmem [shape: f32[2,32,1], index: 2, kind: input, shape index: {}]   ;;  %s3082_s3 = inlined_call_operand.vmem [shape: f32[32,32], index: 3, kind: input, shape index: {}]   ;;  %s3083_s4 = inlined_call_operand.vmem [shape: f32[32,1], index: 4, kind: input, shape index: {}]   ;;  %s3084_s5 = inlined_call_operand.vmem [shape: f32[32,32], index: 5, kind: input, shape index: {}]   ;;  %s3085_s6 = inlined_call_operand.vmem [shape: f32[32,1], index: 6, kind: input, shape index: {}]   ;;  %s3086_s7 = inlined_call_operand.vmem [shape: f32[29,32], index: 7, kind: input, shape index: {}]   ;;  %s3087_s8 = inlined_call_operand.vmem [shape: f32[29,1], index: 8, kind: input, shape index: {}]   ;;  %s3088_s9 = inlined_call_operand.vmem [shape: f32[32,29], index: 9, kind: input, shape index: {}]   ;;  %s3089_s10 = inlined_call_operand.vmem [shape: f32[32,3], index: 10, kind: input, shape index: {}]   ;;  %s3090_s11 = inlined_call_operand.vmem [shape: f32[32,1], index: 11, kind: input, shape index: {}]   ;;  %s3091_s12 = inlined_call_operand.vmem [shape: f32[3,32], index: 12, kind: input, shape index: {}]   ;;  %s3092_s13 = inlined_call_operand.vmem [shape: f32[3,1], index: 13, kind: input, shape index: {}]   ;;  %s3093_s14 = inlined_call_operand.vmem [shape: f32[2,3,256], index: 14, kind: output, shape index: {}]  }
   0x1   :  { %s2521_s15 = smov 0  }
   0x2 LB: > { %s36_s16 = sadd.s32 1, %s2433_s30  ;;  %p2132_p0 = scmp.ge.s32.totalorder %s2437_s15, 1  ;;  %s2437_s15 = sphi %s2521_s15, %s24_s15   ;;  %s2433_s30 = sphi %s2519_s30, %s3131_s30   ;;  %s2429_s29 = sphi %s2517_s29, %s3130_s29  }
   0x3   : > { %p38_p1 = scmp.ge.s32.totalorder %s36_s16, 2  ;;  %p443_p2 = scmp.lt.s32.totalorder %s2437_s15, 3 }
   0x5   : > { %s3133_s16 = smov (%p38_p1, %s36_s16), 0  ;;  %p444_p3 = pnand %p2132_p0, %p443_p2 }
   0x6   : > { %p503_p4 = scmp.lt.s32.totalorder (!%p444_p3), %s2429_s29, 1  ;;  %v2439_v0 = vmov (!%p444_p3), 0.0   ;;  %v2440_v1 = vmov (!%p444_p3), 0   ;;  %vm571_vm0 = vcmask (!%p444_p3), 1042432   ;;  %v528_v6 = vld [vmem:[%s3080_s1] sm:$0xff] (!%p444_p3)  ;;  %vm558_vm1 = vcmask (!%p444_p3), 23552  }
   0x7   : > { %447 = sbr.rel (%p444_p3) target bundleno = 1626 (0x65a), region = 76  ;;  %640 = vmatprep.mubr.f32.mxu1 (!%p444_p3), %v2439_v0  ;;  %1155 = vmatprep.mubr.f32.mxu0 (!%p444_p3), %v2439_v0  ;;  %v529_v9 = vld [vmem:[%s3080_s1 + $0x8] sm:$0xff] (!%p444_p3)  ;;  %v797_v10 = vld [vmem:[%s3083_s4] sm:$0xff] (!%p444_p3)  ;;  %v530_v12 = vld [vmem:[%s3080_s1 + $0x10] sm:$0xff] (!%p444_p3)  ;;  %vm821_vm10 = vcmask (!%p444_p3), 261120  }
   0x8   : > { %2252 = vset.pattern.permute.xlu0 (!%p444_p3), %v2440_v1  ;;  %2253 = vset.pattern.permute.xlu1 (!%p444_p3), %v2440_v1  ;;  %v798_v11 = vld [vmem:[%s3083_s4 + $0x8] sm:$0xff] (!%p444_p3)  ;;  %v799_v13 = vld [vmem:[%s3083_s4 + $0x10] sm:$0xff] (!%p444_p3)  ;;  %v800_v14 = vld [vmem:[%s3083_s4 + $0x18] sm:$0xff] (!%p444_p3) }
   0x9   : > { %v531_v15 = vld [vmem:[%s3080_s1 + $0x18] sm:$0xff] (!%p444_p3)  ;;  %v1055_v16 = vld [vmem:[%s3085_s6] sm:$0xff] (!%p444_p3)  ;;  %v1056_v17 = vld [vmem:[%s3085_s6 + $0x8] sm:$0xff] (!%p444_p3) }
   0xa   : > { %v1057_v18 = vld [vmem:[%s3085_s6 + $0x10] sm:$0xff] (!%p444_p3)  ;;  %v1058_v19 = vld [vmem:[%s3085_s6 + $0x18] sm:$0xff] (!%p444_p3)  ;;  %v1312_v20 = vld [vmem:[%s3087_s8] sm:$0xff] (!%p444_p3) }
   0xb   : > { %v1313_v21 = vld [vmem:[%s3087_s8 + $0x8] sm:$0xff] (!%p444_p3)  ;;  %v1314_v22 = vld [vmem:[%s3087_s8 + $0x10] sm:$0xff] (!%p444_p3)  ;;  %v1315_v23 = vld [vmem:[%s3087_s8 + $0x18] sm:$0x1f] (!%p444_p3) }
   0xc   : > { %v1573_v24 = vld [vmem:[%s3090_s11] sm:$0xff] (!%p444_p3)  ;;  %v1574_v25 = vld [vmem:[%s3090_s11 + $0x8] sm:$0xff] (!%p444_p3)  ;;  %v1575_v26 = vld [vmem:[%s3090_s11 + $0x10] sm:$0xff] (!%p444_p3) }
   0xd   : > { %v1576_v27 = vld [vmem:[%s3090_s11 + $0x18] sm:$0xff] (!%p444_p3)  ;;  %v1944_v28 = vld [vmem:[%s3092_s13] sm:$0x7] (!%p444_p3) }
   0xe   : > { %s3135_s29 = smov (!%p503_p4, %s2429_s29), 1 }
   0xf   : > { %s2172_s17 = sshll.u32 %s3135_s29, 3  ;;  %s2173_s18 = sshll.u32 %s3135_s29, 5 }
  0x10   : > { %s510_s21 = scalar_lea.vmem %s3079_s0, %s2172_s17  ;;  %s516_s24 = scalar_lea.vmem %s3081_s2, %s2173_s18 }
  0x11   : > { %v2549_v2 = vld [vmem:[%s510_s21] sm:$0x77]  ;;  %v534_v5 = vld [vmem:[%s516_s24 + $0x10] sm:$0xff]  ;;  %v533_v7 = vld [vmem:[%s516_s24 + $0x8] sm:$0xff]  ;;  %s525_s23 = scalar_lea.vmem %s3093_s14, %s2172_s17 }
  0x12   : > { %v532_v3 = vld [vmem:[%s516_s24] sm:$0xff]  ;;  %v2553_v4 = vcombine.high %v2549_v2, %v2549_v2  ;;  %548 = vperm.xlu1 %2253, %v534_v5   ;;  %v535_v8 = vld [vmem:[%s516_s24 + $0x18] sm:$0xff] }
  0x13   : > { %538 = vperm.xlu0 %2252, %v532_v3  }
  0x14   : > { %2139 = vmatprep.subr.msk.mxu1 %vm571_vm0, %v2553_v4 }
  0x15   : > { %2140 = vmatpush1.msk.msra.mxu1 %vm571_vm0, %v2549_v2 }
  0x16   : > { %2141 = vmatmul.mubr.msk.f32.vlgmr.msra.gmra.mrb[0].mxu1 %vm558_vm1, %v528_v6  ;;  %553 = vperm.xlu1 %2253, %v535_v8  }
  0x17   : > { %543 = vperm.xlu0 %2252, %v533_v7   ;;  %646 = vmatprep.mubr.f32.mxu1 %v2439_v0 }
  0x1a   : > { %2142 = vmatmul.mubr.msk.f32.gmra.mrb[2].mxu1 %vm558_vm1, %v529_v9  ;;  %808 = vperm.xlu1 %2253, %v798_v11  }
  0x1b   : > { %803 = vperm.xlu0 %2252, %v797_v10   ;;  %652 = vmatprep.mubr.f32.mxu1 %v2439_v0 }
  0x1e   : > { %2143 = vmatmul.mubr.msk.f32.gmra.mrb[4].mxu1 %vm558_vm1, %v530_v12  ;;  %818 = vperm.xlu1 %2253, %v800_v14  }
  0x1f   : > { %813 = vperm.xlu0 %2252, %v799_v13   ;;  %658 = vmatprep.mubr.f32.mxu1 %v2439_v0 }
  0x22   : > { %2144 = vmatmul.mubr.msk.f32.gmra.mrb[6].mxu1 %vm558_vm1, %v531_v15  ;;  %1066 = vperm.xlu1 %2253, %v1056_v17  }
  0x23   : > { %1061 = vperm.xlu0 %2252, %v1055_v16   ;;  %898 = vmatprep.mubr.f32.mxu1 %v2439_v0 }
  0x26   : > { %1076 = vperm.xlu1 %2253, %v1058_v19  }
  0x27   : > { %1071 = vperm.xlu0 %2252, %v1057_v18  }
  0x2a   : > { %1323 = vperm.xlu1 %2253, %v1313_v21  }
  0x2b   : > { %1318 = vperm.xlu0 %2252, %v1312_v20  }
  0x2e   : > { %1333 = vperm.xlu1 %2253, %v1315_v23  }
  0x2f   : > { %1328 = vperm.xlu0 %2252, %v1314_v22  }
  0x32   : > { %1794 = vperm.xlu1 %2253, %v1574_v25  }
  0x33   : > { %1789 = vperm.xlu0 %2252, %v1573_v24  }
  0x36   : > { %1804 = vperm.xlu1 %2253, %v1576_v27  }
  0x37   : > { %1799 = vperm.xlu0 %2252, %v1575_v26  }
  0x3b   : > { %1947 = vperm.xlu0 %2252, %v1944_v28  }
  0x91   : > { %v549_v41 = vpop.permute.xlu1 %548 }
  0x92   : > { %v539_v29 = vpop.permute.xlu0 %538 }
  0x95   : > { %v554_v56 = vpop.permute.xlu1 %553 }
  0x96   : > { %v544_v35 = vpop.permute.xlu0 %543 }
  0xe9   : > { %v642_v30 = vpop.f32.mrb[0].mxu1 }
  0xea   : > { %v2630_v31 = vadd.f32 %v642_v30, %v539_v29  ;;  %v644_v32 = vpop.f32.mrb[1].mxu1 }
  0xeb   : > { %v2632_v33 = vadd.f32 %v644_v32, %v539_v29 }
  0xec   : > { %v673_v34 = vand.u32 2147483647, %v2630_v31 }
  0xed   : > { %v674_v36 = vand.u32 2147483647, %v2632_v33  ;;  %v648_v37 = vpop.f32.mrb[2].mxu1 }
  0xee   : > { %v681_v38 = vmul.f32 -100.0, %v673_v34  ;;  %v2636_v39 = vadd.f32 %v648_v37, %v544_v35  ;;  %v650_v40 = vpop.f32.mrb[3].mxu1 }
  0xef   : > { %v682_v42 = vmul.f32 -100.0, %v674_v36  ;;  %v2638_v43 = vadd.f32 %v650_v40, %v544_v35 }
  0xf0   : > { %v689_v44 = vmul.f32 1.442695, %v681_v38  ;;  %v675_v45 = vand.u32 2147483647, %v2636_v39 }
  0xf1   : > { %v691_v46 = vmul.f32 1.442695, %v682_v42  ;;  %v676_v47 = vand.u32 2147483647, %v2638_v43  ;;  %v654_v48 = vpop.f32.mrb[4].mxu1 }
  0xf2   : > { %2255 = vpow2.f32 %v689_v44  ;;  %v683_v49 = vmul.f32 -100.0, %v675_v45  ;;  %v2642_v50 = vadd.f32 %v654_v48, %v549_v41  ;;  %v656_v51 = vpop.f32.mrb[5].mxu1 }
  0xf3   : > { %2257 = vpow2.f32 %v691_v46  ;;  %v684_v52 = vmul.f32 -100.0, %v676_v47  ;;  %v2644_v53 = vadd.f32 %v656_v51, %v549_v41 }
  0xf4   : > { %v693_v54 = vmul.f32 1.442695, %v683_v49  ;;  %v677_v55 = vand.u32 2147483647, %v2642_v50 }
  0xf5   : > { %v695_v57 = vmul.f32 1.442695, %v684_v52  ;;  %v678_v58 = vand.u32 2147483647, %v2644_v53  ;;  %v660_v59 = vpop.f32.mrb[6].mxu1 }
  0xf6   : > { %2259 = vpow2.f32 %v693_v54  ;;  %v685_v60 = vmul.f32 -100.0, %v677_v55  ;;  %v2648_v61 = vadd.f32 %v660_v59, %v554_v56  ;;  %v662_v62 = vpop.f32.mrb[7].mxu1  ;;  %v665_v55 = vmax.f32 %v2630_v31, 0.0 }
  0xf7   : > { %2261 = vpow2.f32 %v695_v57  ;;  %v686_v63 = vmul.f32 -100.0, %v678_v58  ;;  %v2651_v7 = vadd.f32 %v662_v62, %v554_v56  ;;  %v666_v31 = vmax.f32 %v2632_v33, 0.0 }
  0xf8   : > { %v697_v1 = vmul.f32 1.442695, %v685_v60  ;;  %v679_v3 = vand.u32 2147483647, %v2648_v61 }
  0xf9   : > { %v699_v5 = vmul.f32 1.442695, %v686_v63  ;;  %v680_v13 = vand.u32 2147483647, %v2651_v7  ;;  %v672_v58 = vmax.f32 %v2651_v7, 0.0  ;;  %v795_v7 = vld [vmem:[%s3082_s3 + $0x10] sm:$0xff] }
  0xfa   : > { %2263 = vpow2.f32 %v697_v1  ;;  %v687_v6 = vmul.f32 -100.0, %v679_v3 }
  0xfb   : > { %2265 = vpow2.f32 %v699_v5  ;;  %v688_v20 = vmul.f32 -100.0, %v680_v13  ;;  %v668_v13 = vmax.f32 %v2638_v43, 0.0 }
  0xfc   : > { %v2256_v8 = vpop.eup %2255  ;;  %v701_v9 = vmul.f32 1.442695, %v687_v6 }
  0xfd   : > { %v2258_v10 = vpop.eup %2257  ;;  %v705_v11 = vadd.f32 1.0, %v2256_v8  ;;  %v708_v16 = vmul.f32 -0.5, %v2256_v8  ;;  %v711_v22 = vand.u32 2147483647, %v2256_v8  ;;  %v703_v27 = vmul.f32 1.442695, %v688_v20 }
  0xfe   : > { %v714_v12 = vadd.f32 1.0, %v2258_v10  ;;  %2267 = vpow2.f32 %v701_v9  ;;  %v717_v18 = vmul.f32 -0.5, %v2258_v10  ;;  %v720_v34 = vand.u32 2147483647, %v2258_v10 }
  0xff   : > { %2269 = vlog2.f32 %v705_v11  ;;  %v709_v23 = vadd.f32 1.0, %v708_v16  ;;  %vm2658_vm2 = vcmp.lt.f32.partialorder %v711_v22, 0.0004427343  ;;  %v667_v11 = vmax.f32 %v2636_v39, 0.0 }
 0x100   : > { %v2260_v14 = vpop.eup %2259  ;;  %2271 = vlog2.f32 %v714_v12  ;;  %v718_v26 = vadd.f32 1.0, %v717_v18  ;;  %vm2666_vm3 = vcmp.lt.f32.partialorder %v720_v34, 0.0004427343 }
 0x101   : > { %v2262_v15 = vpop.eup %2261  ;;  %v723_v17 = vadd.f32 1.0, %v2260_v14  ;;  %v726_v24 = vmul.f32 -0.5, %v2260_v14  ;;  %v710_v36 = vmul.f32 %v2256_v8, %v709_v23  ;;  %v729_v38 = vand.u32 2147483647, %v2260_v14 }
 0x102   : > { %v732_v19 = vadd.f32 1.0, %v2262_v15  ;;  %v735_v29 = vmul.f32 -0.5, %v2262_v15  ;;  %v719_v44 = vmul.f32 %v2258_v10, %v718_v26  ;;  %v738_v52 = vand.u32 2147483647, %v2262_v15 }
 0x103   : > { %2273 = vlog2.f32 %v723_v17  ;;  %v727_v37 = vadd.f32 1.0, %v726_v24  ;;  %vm2673_vm4 = vcmp.lt.f32.partialorder %v729_v38, 0.0004427343  ;;  %v671_v38 = vmax.f32 %v2648_v61, 0.0 }
 0x104   : > { %v2264_v21 = vpop.eup %2263  ;;  %2275 = vlog2.f32 %v732_v19  ;;  %v736_v47 = vadd.f32 1.0, %v735_v29  ;;  %vm739_vm5 = vcmp.lt.f32.partialorder %v738_v52, 0.0004427343 }
 0x105   : > { %v741_v25 = vadd.f32 1.0, %v2264_v21  ;;  %v2654_v28 = vpop.eup %2265  ;;  %v744_v45 = vmul.f32 -0.5, %v2264_v21  ;;  %v728_v57 = vmul.f32 %v2260_v14, %v727_v37  ;;  %v747_v63 = vand.u32 2147483647, %v2264_v21 }
 0x106   : > { %v750_v48 = vadd.f32 1.0, %v2654_v28  ;;  %v737_v6 = vmul.f32 %v2262_v15, %v736_v47  ;;  %v753_v29 = vmul.f32 -0.5, %v2654_v28  ;;  %v669_v37 = vmax.f32 %v2642_v50, 0.0 }
 0x107   : > { %2277 = vlog2.f32 %v741_v25  ;;  %v745_v62 = vadd.f32 1.0, %v744_v45  ;;  %vm748_vm6 = vcmp.lt.f32.partialorder %v747_v63, 0.0004427343  ;;  %v756_v45 = vand.u32 2147483647, %v2654_v28 }
 0x108   : > { %v2656_v30 = vpop.eup %2267  ;;  %2279 = vpow2.f32 %v703_v27 }
 0x109   : > { %v2270_v35 = vpop.eup %2269  ;;  %v759_v40 = vadd.f32 1.0, %v2656_v30  ;;  %v762_v1 = vmul.f32 -0.5, %v2656_v30  ;;  %v746_v18 = vmul.f32 %v2264_v21, %v745_v62  ;;  %v765_v33 = vand.u32 2147483647, %v2656_v30 }
 0x10a   : > { %v2272_v41 = vpop.eup %2271  ;;  %v707_v42 = vmul.f32 0.6931472, %v2270_v35  ;;  %vm757_vm8 = vcmp.lt.f32.partialorder %v756_v45, 0.0004427343 }
 0x10b   : > { %v716_v46 = vmul.f32 0.6931472, %v2272_v41  ;;  %2281 = vlog2.f32 %v759_v40  ;;  %v763_v19 = vadd.f32 1.0, %v762_v1  ;;  %vm766_vm7 = vcmp.lt.f32.partialorder %v765_v33, 0.0004427343  ;;  %v796_v1 = vld [vmem:[%s3082_s3 + $0x18] sm:$0xff] }
 0x10c   : > { %v713_v49 = vsel %vm2658_vm2, %v710_v36, %v707_v42  ;;  %2283 = vlog2.f32 %v750_v48  ;;  %v754_v41 = vadd.f32 1.0, %v753_v29 }
 0x10d   : > { %v2274_v54 = vpop.eup %2273  ;;  %v722_v56 = vsel %vm2666_vm3, %v719_v44, %v716_v46  ;;  %v777_v3 = vmul.f32 0.01, %v713_v49  ;;  %v764_v32 = vmul.f32 %v2656_v30, %v763_v19 }
 0x10e   : > { %v2276_v59 = vpop.eup %2275  ;;  %v725_v60 = vmul.f32 0.6931472, %v2274_v54  ;;  %v778_v8 = vmul.f32 0.01, %v722_v56  ;;  %v755_v48 = vmul.f32 %v2654_v28, %v754_v41  ;;  %v793_v28 = vld [vmem:[%s3082_s3] sm:$0xff] }
 0x10f   : > { %v734_v5 = vmul.f32 0.6931472, %v2276_v59  ;;  %v785_v15 = vadd.f32 %v777_v3, %v665_v55  ;;  %v804_v3 = vpop.permute.xlu0 %803 }
 0x110   : > { %v731_v9 = vsel %vm2673_vm4, %v728_v57, %v725_v60  ;;  %v786_v23 = vadd.f32 %v778_v8, %v666_v31  ;;  %v670_v57 = vmax.f32 %v2644_v53, 0.0  ;;  %v794_v53 = vld [vmem:[%s3082_s3 + $0x8] sm:$0xff] }
 0x111   : > { %v2278_v10 = vpop.eup %2277  ;;  %v779_v12 = vmul.f32 0.01, %v731_v9  ;;  %v740_v14 = vsel %vm739_vm5, %v737_v6, %v734_v5 }
 0x112   : > { %v780_v16 = vmul.f32 0.01, %v740_v14  ;;  %v743_v17 = vmul.f32 0.6931472, %v2278_v10  ;;  %v2280_v22 = vpop.eup %2279  ;;  %v809_v10 = vpop.permute.xlu1 %808 }
 0x113   : > { %v787_v20 = vadd.f32 %v779_v12, %v667_v11  ;;  %v768_v39 = vadd.f32 1.0, %v2280_v22  ;;  %v771_v42 = vmul.f32 -0.5, %v2280_v22  ;;  %v774_v51 = vand.u32 2147483647, %v2280_v22 }
 0x114   : > { %v788_v24 = vadd.f32 %v780_v16, %v668_v13  ;;  %v749_v25 = vsel %vm748_vm6, %v746_v18, %v743_v17 }
 0x115   : > { %v2282_v26 = vpop.eup %2281  ;;  %v2177_v27 = vpack.c.bf16 %v787_v20, %v785_v15  ;;  %v781_v21 = vmul.f32 0.01, %v749_v25  ;;  %2285 = vlog2.f32 %v768_v39  ;;  %v772_v49 = vadd.f32 1.0, %v771_v42  ;;  %v814_v20 = vpop.permute.xlu0 %813 }
 0x116   : > { %v761_v43 = vmul.f32 0.6931472, %v2282_v26  ;;  %v2175_v34 = vpack.c.bf16 %v788_v24, %v786_v23  ;;  %v2284_v36 = vpop.eup %2283  ;;  %vm775_vm9 = vcmp.lt.f32.partialorder %v774_v51, 0.0004427343 }
 0x117   : > { %v789_v44 = vadd.f32 %v781_v21, %v669_v37  ;;  %v752_v30 = vmul.f32 0.6931472, %v2284_v36  ;;  %v773_v55 = vmul.f32 %v2280_v22, %v772_v49 }
 0x118   : > { %v767_v35 = vsel %vm766_vm7, %v764_v32, %v761_v43  ;;  %2176 = vmatprep.subr.bf16.mxu1 %v2175_v34  ;;  %v819_v32 = vpop.permute.xlu1 %818 }
 0x119   : > { %v783_v40 = vmul.f32 0.01, %v767_v35  ;;  %2178 = vmatpush1.bf16.msra.mxu1 %v2177_v27  ;;  %v758_v52 = vsel %vm757_vm8, %v755_v48, %v752_v30 }
 0x11a   : > { %v782_v61 = vmul.f32 0.01, %v758_v52 }
 0x11b   : > { %v791_v46 = vadd.f32 %v783_v40, %v671_v38 }
 0x11c   : > { %v790_v60 = vadd.f32 %v782_v61, %v670_v57 }
 0x11d   : > { %v2181_v47 = vpack.c.bf16 %v791_v46, %v789_v44 }
 0x11f   : > { %v2286_v54 = vpop.eup %2285 }
 0x120   : > { %v770_v50 = vmul.f32 0.6931472, %v2286_v54 }
 0x122   : > { %v776_v56 = vsel %vm775_vm9, %v773_v55, %v770_v50 }
 0x123   : > { %v784_v59 = vmul.f32 0.01, %v776_v56 }
 0x125   : > { %v792_v62 = vadd.f32 %v784_v59, %v672_v58 }
 0x127   : > { %v2179_v63 = vpack.c.bf16 %v792_v62, %v790_v60 }
 0x129   : > { %2180 = vmatprep.subr.bf16.mxu1 %v2179_v63 }
 0x12a   : > { %2182 = vmatpush1.bf16.msra.mxu1 %v2181_v47 }
 0x12d   : > { %2145 = vmatmul.mubr.msk.f32.vlgmr.msra.gmra.mrb[8].mxu1 %vm821_vm10, %v793_v28 }
 0x12e   : > { %904 = vmatprep.mubr.f32.mxu1 %v2439_v0 }
 0x131   : > { %2146 = vmatmul.mubr.msk.f32.gmra.mrb[10].mxu1 %vm821_vm10, %v794_v53 }
 0x132   : > { %910 = vmatprep.mubr.f32.mxu1 %v2439_v0 }
 0x135   : > { %2147 = vmatmul.mubr.msk.f32.gmra.mrb[12].mxu1 %vm821_vm10, %v795_v7 }
 0x136   : > { %916 = vmatprep.mubr.f32.mxu1 %v2439_v0 }
 0x139   : > { %2148 = vmatmul.mubr.msk.f32.gmra.mrb[14].mxu1 %vm821_vm10, %v796_v1 }
 0x13a   : > { %1412 = vmatprep.mubr.f32.mxu1 %v2439_v0 }
 0x200   : > { %v900_v5 = vpop.f32.mrb[8].mxu1 }
 0x201   : > { %v2712_v6 = vadd.f32 %v900_v5, %v804_v3  ;;  %v902_v31 = vpop.f32.mrb[9].mxu1 }
 0x202   : > { %v2714_v8 = vadd.f32 %v902_v31, %v804_v3 }
 0x203   : > { %v931_v9 = vand.u32 2147483647, %v2712_v6  ;;  %v923_v53 = vmax.f32 %v2712_v6, 0.0 }
 0x204   : > { %v932_v11 = vand.u32 2147483647, %v2714_v8  ;;  %v906_v12 = vpop.f32.mrb[10].mxu1  ;;  %v924_v3 = vmax.f32 %v2714_v8, 0.0 }
 0x205   : > { %v939_v13 = vmul.f32 -100.0, %v931_v9  ;;  %v2718_v14 = vadd.f32 %v906_v12, %v809_v10  ;;  %v908_v16 = vpop.f32.mrb[11].mxu1 }
 0x206   : > { %v940_v17 = vmul.f32 -100.0, %v932_v11  ;;  %v2720_v18 = vadd.f32 %v908_v16, %v809_v10 }
 0x207   : > { %v947_v19 = vmul.f32 1.442695, %v939_v13  ;;  %v933_v15 = vand.u32 2147483647, %v2718_v14  ;;  %v925_v10 = vmax.f32 %v2718_v14, 0.0 }
 0x208   : > { %v949_v33 = vmul.f32 1.442695, %v940_v17  ;;  %v934_v22 = vand.u32 2147483647, %v2720_v18  ;;  %v912_v23 = vpop.f32.mrb[12].mxu1  ;;  %v926_v16 = vmax.f32 %v2720_v18, 0.0 }
 0x209   : > { %2287 = vpow2.f32 %v947_v19  ;;  %v941_v24 = vmul.f32 -100.0, %v933_v15  ;;  %v2724_v25 = vadd.f32 %v912_v23, %v814_v20  ;;  %v914_v26 = vpop.f32.mrb[13].mxu1 }
 0x20a   : > { %2289 = vpow2.f32 %v949_v33  ;;  %v942_v27 = vmul.f32 -100.0, %v934_v22  ;;  %v2726_v39 = vadd.f32 %v914_v26, %v814_v20 }
 0x20b   : > { %v951_v29 = vmul.f32 1.442695, %v941_v24  ;;  %v935_v43 = vand.u32 2147483647, %v2724_v25  ;;  %v927_v8 = vmax.f32 %v2724_v25, 0.0  ;;  %v1051_v25 = vld [vmem:[%s3084_s5] sm:$0xff] }
 0x20c   : > { %v953_v34 = vmul.f32 1.442695, %v942_v27  ;;  %v936_v21 = vand.u32 2147483647, %v2726_v39  ;;  %v918_v35 = vpop.f32.mrb[14].mxu1 }
 0x20d   : > { %2291 = vpow2.f32 %v951_v29  ;;  %v943_v36 = vmul.f32 -100.0, %v935_v43  ;;  %v2730_v37 = vadd.f32 %v918_v35, %v819_v32  ;;  %v920_v38 = vpop.f32.mrb[15].mxu1 }
 0x20e   : > { %2293 = vpow2.f32 %v953_v34  ;;  %v944_v40 = vmul.f32 -100.0, %v936_v21  ;;  %v2732_v41 = vadd.f32 %v920_v38, %v819_v32 }
 0x20f   : > { %v955_v42 = vmul.f32 1.442695, %v943_v36  ;;  %v937_v44 = vand.u32 2147483647, %v2730_v37 }
 0x210   : > { %v957_v45 = vmul.f32 1.442695, %v944_v40  ;;  %v938_v46 = vand.u32 2147483647, %v2732_v41 }
 0x211   : > { %2295 = vpow2.f32 %v955_v42  ;;  %v945_v30 = vmul.f32 -100.0, %v937_v44 }
 0x212   : > { %2297 = vpow2.f32 %v957_v45  ;;  %v946_v47 = vmul.f32 -100.0, %v938_v46 }
 0x213   : > { %v2288_v48 = vpop.eup %2287  ;;  %v959_v49 = vmul.f32 1.442695, %v945_v30 }
 0x214   : > { %v2290_v51 = vpop.eup %2289  ;;  %v961_v52 = vmul.f32 1.442695, %v946_v47  ;;  %v963_v54 = vadd.f32 1.0, %v2288_v48  ;;  %v966_v59 = vmul.f32 -0.5, %v2288_v48  ;;  %v969_v63 = vand.u32 2147483647, %v2288_v48 }
 0x215   : > { %2299 = vpow2.f32 %v959_v49  ;;  %v972_v50 = vadd.f32 1.0, %v2290_v51  ;;  %v975_v57 = vmul.f32 -0.5, %v2290_v51  ;;  %v978_v62 = vand.u32 2147483647, %v2290_v51 }
 0x216   : > { %2301 = vpow2.f32 %v961_v52  ;;  %v967_v9 = vadd.f32 1.0, %v966_v59  ;;  %vm2746_vm12 = vcmp.lt.f32.partialorder %v969_v63, 0.0004427343 }
 0x217   : > { %v2292_v55 = vpop.eup %2291  ;;  %2303 = vlog2.f32 %v972_v50  ;;  %v976_v31 = vadd.f32 1.0, %v975_v57  ;;  %vm2742_vm11 = vcmp.lt.f32.partialorder %v978_v62, 0.0004427343 }
 0x218   : > { %v2294_v61 = vpop.eup %2293  ;;  %2305 = vlog2.f32 %v963_v54  ;;  %v981_v56 = vadd.f32 1.0, %v2292_v55  ;;  %v984_v1 = vmul.f32 -0.5, %v2292_v55  ;;  %v987_v22 = vand.u32 2147483647, %v2292_v55 }
 0x219   : > { %v990_v58 = vadd.f32 1.0, %v2294_v61  ;;  %v993_v11 = vmul.f32 -0.5, %v2294_v61  ;;  %v996_v12 = vand.u32 2147483647, %v2294_v61  ;;  %v977_v26 = vmul.f32 %v2290_v51, %v976_v31 }
 0x21a   : > { %2307 = vlog2.f32 %v981_v56  ;;  %v985_v33 = vadd.f32 1.0, %v984_v1  ;;  %v968_v27 = vmul.f32 %v2288_v48, %v967_v9  ;;  %vm2760_vm14 = vcmp.lt.f32.partialorder %v987_v22, 0.0004427343 }
 0x21b   : > { %v2296_v60 = vpop.eup %2295  ;;  %2309 = vlog2.f32 %v990_v58  ;;  %v994_v32 = vadd.f32 1.0, %v993_v11  ;;  %vm2754_vm13 = vcmp.lt.f32.partialorder %v996_v12, 0.0004427343 }
 0x21c   : > { %v2298_v28 = vpop.eup %2297  ;;  %v999_v7 = vadd.f32 1.0, %v2296_v60  ;;  %v1002_v20 = vmul.f32 -0.5, %v2296_v60  ;;  %v1005_v21 = vand.u32 2147483647, %v2296_v60  ;;  %v986_v44 = vmul.f32 %v2292_v55, %v985_v33 }
 0x21d   : > { %v1008_v5 = vadd.f32 1.0, %v2298_v28  ;;  %v1011_v24 = vmul.f32 -0.5, %v2298_v28  ;;  %v1014_v35 = vand.u32 2147483647, %v2298_v28  ;;  %v995_v54 = vmul.f32 %v2294_v61, %v994_v32 }
 0x21e   : > { %2311 = vlog2.f32 %v999_v7  ;;  %v1003_v40 = vadd.f32 1.0, %v1002_v20  ;;  %vm2768_vm15 = vcmp.lt.f32.partialorder %v1005_v21, 0.0004427343  ;;  %v928_v21 = vmax.f32 %v2726_v39, 0.0  ;;  %v1052_v39 = vld [vmem:[%s3084_s5 + $0x8] sm:$0xff] }
 0x21f   : > { %v2739_v13 = vpop.eup %2299  ;;  %2313 = vlog2.f32 %v1008_v5  ;;  %v1012_v30 = vadd.f32 1.0, %v1011_v24  ;;  %vm2772_vm2 = vcmp.lt.f32.partialorder %v1014_v35, 0.0004427343 }
 0x220   : > { %v2750_v15 = vpop.eup %2301  ;;  %v1017_v14 = vadd.f32 1.0, %v2739_v13  ;;  %v1020_v47 = vmul.f32 -0.5, %v2739_v13  ;;  %v1004_v62 = vmul.f32 %v2296_v60, %v1003_v40  ;;  %v1023_v63 = vand.u32 2147483647, %v2739_v13 }
 0x221   : > { %v2304_v23 = vpop.eup %2303  ;;  %v1026_v18 = vadd.f32 1.0, %v2750_v15  ;;  %v1029_v51 = vmul.f32 -0.5, %v2750_v15  ;;  %v1013_v31 = vmul.f32 %v2298_v28, %v1012_v30 }
 0x222   : > { %v2306_v29 = vpop.eup %2305  ;;  %2315 = vlog2.f32 %v1017_v14  ;;  %v974_v43 = vmul.f32 0.6931472, %v2304_v23  ;;  %v1021_v9 = vadd.f32 1.0, %v1020_v47  ;;  %v1032_v14 = vand.u32 2147483647, %v2750_v15 }
 0x223   : > { %2317 = vlog2.f32 %v1026_v18  ;;  %v965_v36 = vmul.f32 0.6931472, %v2306_v29  ;;  %v1030_v17 = vadd.f32 1.0, %v1029_v51  ;;  %vm1024_vm3 = vcmp.lt.f32.partialorder %v1023_v63, 0.0004427343 }
 0x224   : > { %v2308_v38 = vpop.eup %2307  ;;  %v980_v42 = vsel %vm2742_vm11, %v977_v26, %v974_v43  ;;  %v1022_v6 = vmul.f32 %v2739_v13, %v1021_v9  ;;  %vm1033_vm4 = vcmp.lt.f32.partialorder %v1032_v14, 0.0004427343  ;;  %v930_v13 = vmax.f32 %v2732_v41, 0.0 }
 0x225   : > { %v2310_v46 = vpop.eup %2309  ;;  %v971_v48 = vsel %vm2746_vm12, %v968_v27, %v965_v36  ;;  %v983_v49 = vmul.f32 0.6931472, %v2308_v38  ;;  %v1036_v57 = vmul.f32 0.01, %v980_v42  ;;  %v1031_v29 = vmul.f32 %v2750_v15, %v1030_v17 }
 0x226   : > { %v992_v52 = vmul.f32 0.6931472, %v2310_v46  ;;  %v1035_v50 = vmul.f32 0.01, %v971_v48  ;;  %v1067_v48 = vpop.permute.xlu1 %1066 }
 0x227   : > { %v989_v58 = vsel %vm2760_vm14, %v986_v44, %v983_v49  ;;  %v1044_v33 = vadd.f32 %v1036_v57, %v924_v3  ;;  %v929_v3 = vmax.f32 %v2730_v37, 0.0  ;;  %v1053_v37 = vld [vmem:[%s3084_s5 + $0x10] sm:$0xff] }
 0x228   : > { %v2312_v59 = vpop.eup %2311  ;;  %v998_v61 = vsel %vm2754_vm13, %v995_v54, %v992_v52  ;;  %v1037_v7 = vmul.f32 0.01, %v989_v58  ;;  %v1043_v19 = vadd.f32 %v1035_v50, %v923_v53 }
 0x229   : > { %v2314_v1 = vpop.eup %2313  ;;  %v1001_v5 = vmul.f32 0.6931472, %v2312_v59  ;;  %v1038_v11 = vmul.f32 0.01, %v998_v61 }
 0x22a   : > { %v1010_v12 = vmul.f32 0.6931472, %v2314_v1  ;;  %v1045_v20 = vadd.f32 %v1037_v7, %v925_v10  ;;  %v1077_v17 = vpop.permute.xlu1 %1076 }
 0x22b   : > { %v1007_v60 = vsel %vm2768_vm15, %v1004_v62, %v1001_v5  ;;  %v1046_v22 = vadd.f32 %v1038_v11, %v926_v16 }
 0x22c   : > { %v2316_v23 = vpop.eup %2315  ;;  %v1016_v28 = vsel %vm2772_vm2, %v1013_v31, %v1010_v12  ;;  %v2185_v24 = vpack.c.bf16 %v1045_v20, %v1043_v19  ;;  %v1039_v10 = vmul.f32 0.01, %v1007_v60 }
 0x22d   : > { %v2318_v18 = vpop.eup %2317  ;;  %v1019_v26 = vmul.f32 0.6931472, %v2316_v23  ;;  %v2183_v53 = vpack.c.bf16 %v1046_v22, %v1044_v33  ;;  %v1040_v43 = vmul.f32 0.01, %v1016_v28 }
 0x22e   : > { %v1028_v27 = vmul.f32 0.6931472, %v2318_v18  ;;  %v1047_v36 = vadd.f32 %v1039_v10, %v927_v8 }
 0x22f   : > { %v1025_v32 = vsel %vm1024_vm3, %v1022_v6, %v1019_v26  ;;  %2184 = vmatprep.subr.bf16.mxu0 %v2183_v53  ;;  %v1048_v40 = vadd.f32 %v1040_v43, %v928_v21 }
 0x230   : > { %v1041_v16 = vmul.f32 0.01, %v1025_v32  ;;  %v1034_v34 = vsel %vm1033_vm4, %v1031_v29, %v1028_v27  ;;  %2186 = vmatpush1.bf16.msra.mxu0 %v2185_v24 }
 0x231   : > { %v1042_v35 = vmul.f32 0.01, %v1034_v34 }
 0x232   : > { %v1049_v38 = vadd.f32 %v1041_v16, %v929_v3 }
 0x233   : > { %v1050_v15 = vadd.f32 %v1042_v35, %v930_v13 }
 0x234   : > { %v2189_v42 = vpack.c.bf16 %v1049_v38, %v1047_v36 }
 0x235   : > { %v2187_v44 = vpack.c.bf16 %v1050_v15, %v1048_v40 }
 0x237   : > { %2188 = vmatprep.subr.bf16.mxu0 %v2187_v44 }
 0x238   : > { %2190 = vmatpush1.bf16.msra.mxu0 %v2189_v42 }
 0x239   : > { %2157 = vmatprep.subr.msk.mxu0 %vm571_vm0, %v2553_v4  ;;  %v1054_v4 = vld [vmem:[%s3084_s5 + $0x18] sm:$0xff] }
 0x23b   : > { %2149 = vmatmul.mubr.msk.f32.vlgmr.msra.gmra.mrb[0].mxu0 %vm821_vm10, %v1051_v25 }
 0x23c   : > { %1161 = vmatprep.mubr.f32.mxu0 %v2439_v0  ;;  %2158 = vmatpush1.msk.msra.mxu0 %vm571_vm0, %v2549_v2  ;;  %v1062_v2 = vpop.permute.xlu0 %1061 }
 0x23f   : > { %2150 = vmatmul.mubr.msk.f32.gmra.mrb[2].mxu0 %vm821_vm10, %v1052_v39 }
 0x240   : > { %1167 = vmatprep.mubr.f32.mxu0 %v2439_v0  ;;  %v1072_v59 = vpop.permute.xlu0 %1071 }
 0x243   : > { %2151 = vmatmul.mubr.msk.f32.gmra.mrb[4].mxu0 %vm821_vm10, %v1053_v37 }
 0x244   : > { %1173 = vmatprep.mubr.f32.mxu0 %v2439_v0 }
 0x247   : > { %2152 = vmatmul.mubr.msk.f32.gmra.mrb[6].mxu0 %vm821_vm10, %v1054_v4 }
 0x248   : > { %1653 = vmatprep.mubr.f32.mxu0 %v2439_v0 }
 0x30e   : > { %v1157_v41 = vpop.f32.mrb[0].mxu0 }
 0x30f   : > { %v2820_v45 = vadd.f32 %v1157_v41, %v1062_v2  ;;  %v1159_v46 = vpop.f32.mrb[1].mxu0 }
 0x310   : > { %v2822_v30 = vadd.f32 %v1159_v46, %v1062_v2 }
 0x311   : > { %v1188_v47 = vand.u32 2147483647, %v2820_v45 }
 0x312   : > { %v1189_v49 = vand.u32 2147483647, %v2822_v30  ;;  %v1163_v51 = vpop.f32.mrb[2].mxu0 }
 0x313   : > { %v1196_v52 = vmul.f32 -100.0, %v1188_v47  ;;  %v2826_v54 = vadd.f32 %v1163_v51, %v1067_v48  ;;  %v1165_v50 = vpop.f32.mrb[3].mxu0 }
 0x314   : > { %v1197_v56 = vmul.f32 -100.0, %v1189_v49  ;;  %v2828_v55 = vadd.f32 %v1165_v50, %v1067_v48 }
 0x315   : > { %v1204_v57 = vmul.f32 1.442695, %v1196_v52  ;;  %v1190_v58 = vand.u32 2147483647, %v2826_v54 }
 0x316   : > { %v1206_v62 = vmul.f32 1.442695, %v1197_v56  ;;  %v1191_v63 = vand.u32 2147483647, %v2828_v55  ;;  %v1169_v61 = vpop.f32.mrb[4].mxu0 }
 0x317   : > { %2319 = vpow2.f32 %v1204_v57  ;;  %v1198_v7 = vmul.f32 -100.0, %v1190_v58  ;;  %v2832_v1 = vadd.f32 %v1169_v61, %v1072_v59  ;;  %v1171_v5 = vpop.f32.mrb[5].mxu0 }
 0x318   : > { %2321 = vpow2.f32 %v1206_v62  ;;  %v1199_v31 = vmul.f32 -100.0, %v1191_v63  ;;  %v2834_v9 = vadd.f32 %v1171_v5, %v1072_v59 }
 0x319   : > { %v1208_v11 = vmul.f32 1.442695, %v1198_v7  ;;  %v1192_v12 = vand.u32 2147483647, %v2832_v1 }
 0x31a   : > { %v1210_v19 = vmul.f32 1.442695, %v1199_v31  ;;  %v1193_v20 = vand.u32 2147483647, %v2834_v9  ;;  %v1175_v60 = vpop.f32.mrb[6].mxu0  ;;  %v1180_v31 = vmax.f32 %v2820_v45, 0.0 }
 0x31b   : > { %2323 = vpow2.f32 %v1208_v11  ;;  %v1200_v14 = vmul.f32 -100.0, %v1192_v12  ;;  %v2838_v33 = vadd.f32 %v1175_v60, %v1077_v17  ;;  %v1177_v22 = vpop.f32.mrb[7].mxu0  ;;  %v1181_v45 = vmax.f32 %v2822_v30, 0.0 }
 0x31c   : > { %2325 = vpow2.f32 %v1210_v19  ;;  %v1201_v23 = vmul.f32 -100.0, %v1193_v20  ;;  %v2841_v6 = vadd.f32 %v1177_v22, %v1077_v17 }
 0x31d   : > { %v1212_v28 = vmul.f32 1.442695, %v1200_v14  ;;  %v1194_v24 = vand.u32 2147483647, %v2838_v33 }
 0x31e   : > { %v1214_v18 = vmul.f32 1.442695, %v1201_v23  ;;  %v1195_v32 = vand.u32 2147483647, %v2841_v6 }
 0x31f   : > { %2327 = vpow2.f32 %v1212_v28  ;;  %v1202_v26 = vmul.f32 -100.0, %v1194_v24 }
 0x320   : > { %2329 = vpow2.f32 %v1214_v18  ;;  %v1203_v35 = vmul.f32 -100.0, %v1195_v32 }
 0x321   : > { %v2320_v53 = vpop.eup %2319  ;;  %v1216_v10 = vmul.f32 1.442695, %v1202_v26 }
 0x322   : > { %v2322_v27 = vpop.eup %2321  ;;  %v1220_v29 = vadd.f32 1.0, %v2320_v53  ;;  %v1223_v16 = vmul.f32 -0.5, %v2320_v53  ;;  %v1226_v38 = vand.u32 2147483647, %v2320_v53  ;;  %v1218_v25 = vmul.f32 1.442695, %v1203_v35 }
 0x323   : > { %v1229_v43 = vadd.f32 1.0, %v2322_v27  ;;  %2331 = vpow2.f32 %v1216_v10  ;;  %v1232_v21 = vmul.f32 -0.5, %v2322_v27  ;;  %v1235_v41 = vand.u32 2147483647, %v2322_v27 }
 0x324   : > { %2333 = vlog2.f32 %v1220_v29  ;;  %v1224_v40 = vadd.f32 1.0, %v1223_v16  ;;  %vm2848_vm0 = vcmp.lt.f32.partialorder %v1226_v38, 0.0004427343  ;;  %v1182_v10 = vmax.f32 %v2826_v54, 0.0 }
 0x325   : > { %v2324_v8 = vpop.eup %2323  ;;  %2335 = vlog2.f32 %v1229_v43  ;;  %v1233_v44 = vadd.f32 1.0, %v1232_v21  ;;  %vm2856_vm5 = vcmp.lt.f32.partialorder %v1235_v41, 0.0004427343  ;;  %v1183_v29 = vmax.f32 %v2828_v55, 0.0 }
 0x326   : > { %v2326_v3 = vpop.eup %2325  ;;  %v1238_v34 = vadd.f32 1.0, %v2324_v8  ;;  %v1241_v15 = vmul.f32 -0.5, %v2324_v8  ;;  %v1225_v47 = vmul.f32 %v2320_v53, %v1224_v40  ;;  %v1244_v49 = vand.u32 2147483647, %v2324_v8 }
 0x327   : > { %v1247_v13 = vadd.f32 1.0, %v2326_v3  ;;  %v1250_v37 = vmul.f32 -0.5, %v2326_v3  ;;  %v1234_v56 = vmul.f32 %v2322_v27, %v1233_v44  ;;  %v1253_v7 = vand.u32 2147483647, %v2326_v3 }
 0x328   : > { %2337 = vlog2.f32 %v1238_v34  ;;  %v1242_v48 = vadd.f32 1.0, %v1241_v15  ;;  %vm2863_vm6 = vcmp.lt.f32.partialorder %v1244_v49, 0.0004427343 }
 0x329   : > { %v2328_v36 = vpop.eup %2327  ;;  %2339 = vlog2.f32 %v1247_v13  ;;  %v1251_v59 = vadd.f32 1.0, %v1250_v37  ;;  %vm1254_vm7 = vcmp.lt.f32.partialorder %v1253_v7, 0.0004427343 }
 0x32a   : > { %v1256_v42 = vadd.f32 1.0, %v2328_v36  ;;  %v2844_v39 = vpop.eup %2329  ;;  %v1259_v57 = vmul.f32 -0.5, %v2328_v36  ;;  %v1243_v12 = vmul.f32 %v2324_v8, %v1242_v48  ;;  %v1262_v14 = vand.u32 2147483647, %v2328_v36 }
 0x32b   : > { %v1265_v62 = vadd.f32 1.0, %v2844_v39  ;;  %v1252_v24 = vmul.f32 %v2326_v3, %v1251_v59  ;;  %v1268_v44 = vmul.f32 -0.5, %v2844_v39 }
 0x32c   : > { %2341 = vlog2.f32 %v1256_v42  ;;  %v1260_v60 = vadd.f32 1.0, %v1259_v57  ;;  %vm1263_vm8 = vcmp.lt.f32.partialorder %v1262_v14, 0.0004427343  ;;  %v1569_v14 = vld [vmem:[%s3089_s10] sm:$0xff] }
 0x32d   : > { %v2846_v4 = vpop.eup %2331  ;;  %2343 = vpow2.f32 %v1218_v25  ;;  %v1269_v49 = vadd.f32 1.0, %v1268_v44  ;;  %2159 = vmatmul.mubr.msk.f32.vlgmr.msra.gmra.mrb[8].mxu0 %vm558_vm1, %v1569_v14 }
 0x32e   : > { %v2334_v46 = vpop.eup %2333  ;;  %v1274_v51 = vadd.f32 1.0, %v2846_v4  ;;  %v1277_v22 = vmul.f32 -0.5, %v2846_v4  ;;  %v1261_v16 = vmul.f32 %v2328_v36, %v1260_v60  ;;  %v1280_v30 = vand.u32 2147483647, %v2846_v4  ;;  %v1311_v60 = vld [vmem:[%s3086_s7 + $0x18] sm:$0x1f]  ;;  %1659 = vmatprep.mubr.f32.mxu0 %v2439_v0 }
 0x32f   : > { %v2336_v52 = vpop.eup %2335  ;;  %v1222_v50 = vmul.f32 0.6931472, %v2334_v46  ;;  %v1184_v46 = vmax.f32 %v2832_v1, 0.0 }
 0x330   : > { %v1231_v58 = vmul.f32 0.6931472, %v2336_v52  ;;  %2345 = vlog2.f32 %v1274_v51  ;;  %v1278_v34 = vadd.f32 1.0, %v1277_v22  ;;  %vm1281_vm9 = vcmp.lt.f32.partialorder %v1280_v30, 0.0004427343  ;;  %v1570_v22 = vld [vmem:[%s3089_s10 + $0x8] sm:$0xff] }
 0x331   : > { %v1228_v63 = vsel %vm2848_vm0, %v1225_v47, %v1222_v50  ;;  %2347 = vlog2.f32 %v1265_v62  ;;  %v1186_v47 = vmax.f32 %v2838_v33, 0.0  ;;  %v1271_v50 = vand.u32 2147483647, %v2844_v39  ;;  %2160 = vmatmul.mubr.msk.f32.gmra.mrb[10].mxu0 %vm558_vm1, %v1570_v22 }
 0x332   : > { %v2338_v5 = vpop.eup %2337  ;;  %v1237_v11 = vsel %vm2856_vm5, %v1234_v56, %v1231_v58  ;;  %v1292_v23 = vmul.f32 0.01, %v1228_v63  ;;  %v1279_v25 = vmul.f32 %v2846_v4, %v1278_v34  ;;  %v1270_v58 = vmul.f32 %v2844_v39, %v1269_v49  ;;  %v1308_v39 = vld [vmem:[%s3086_s7] sm:$0xff]  ;;  %1665 = vmatprep.mubr.f32.mxu0 %v2439_v0 }
 0x333   : > { %v2340_v19 = vpop.eup %2339  ;;  %v1240_v20 = vmul.f32 0.6931472, %v2338_v5  ;;  %v1293_v18 = vmul.f32 0.01, %v1237_v11  ;;  %vm1272_vm11 = vcmp.lt.f32.partialorder %v1271_v50, 0.0004427343 }
 0x334   : > { %v1249_v28 = vmul.f32 0.6931472, %v2340_v19  ;;  %v1300_v3 = vadd.f32 %v1292_v23, %v1180_v31  ;;  %v1185_v31 = vmax.f32 %v2834_v9, 0.0  ;;  %v1187_v11 = vmax.f32 %v2841_v6, 0.0  ;;  %v1309_v9 = vld [vmem:[%s3086_s7 + $0x8] sm:$0xff]  ;;  %v1310_v6 = vld [vmem:[%s3086_s7 + $0x10] sm:$0xff] }
 0x335   : > { %v1246_v26 = vsel %vm2863_vm6, %v1243_v12, %v1240_v20  ;;  %v1301_v35 = vadd.f32 %v1293_v18, %v1181_v45  ;;  %v1571_v23 = vld [vmem:[%s3089_s10 + $0x10] sm:$0xff]  ;;  %vm1691_vm5 = vcmask 1044480   ;;  %vm2441_vm6 = vmmov 1  }
 0x336   : > { %v2342_v53 = vpop.eup %2341  ;;  %v1294_v27 = vmul.f32 0.01, %v1246_v26  ;;  %v1255_v43 = vsel %vm1254_vm7, %v1252_v24, %v1249_v28  ;;  %2161 = vmatmul.mubr.msk.f32.gmra.mrb[12].mxu0 %vm558_vm1, %v1571_v23  ;;  %v1572_v28 = vld [vmem:[%s3089_s10 + $0x18] sm:$0xff]  ;;  %v1319_v24 = vpop.permute.xlu0 %1318  ;;  %vm2204_vm7 = vmpackc.low %vm1691_vm5, %vm2441_vm6 }
 0x337   : > { %v1295_v32 = vmul.f32 0.01, %v1255_v43  ;;  %v1258_v8 = vmul.f32 0.6931472, %v2342_v53  ;;  %v2344_v13 = vpop.eup %2343  ;;  %1671 = vmatprep.mubr.f32.mxu0 %v2439_v0 }
 0x338   : > { %v1302_v21 = vadd.f32 %v1294_v27, %v1182_v10  ;;  %v1283_v54 = vadd.f32 1.0, %v2344_v13  ;;  %v1286_v51 = vmul.f32 -0.5, %v2344_v13  ;;  %v1289_v62 = vand.u32 2147483647, %v2344_v13  ;;  %v1324_v27 = vpop.permute.xlu1 %1323 }
 0x339   : > { %v1303_v38 = vadd.f32 %v1295_v32, %v1183_v29  ;;  %v1264_v40 = vsel %vm1263_vm8, %v1261_v16, %v1258_v8  ;;  %vm1678_vm8 = vcmask 236544  }
 0x33a   : > { %v2346_v15 = vpop.eup %2345  ;;  %v2193_v42 = vpack.c.bf16 %v1302_v21, %v1300_v3  ;;  %v1296_v36 = vmul.f32 0.01, %v1264_v40  ;;  %2349 = vlog2.f32 %v1283_v54  ;;  %v1287_v59 = vadd.f32 1.0, %v1286_v51  ;;  %2162 = vmatmul.mubr.msk.f32.gmra.mrb[14].mxu0 %vm558_vm1, %v1572_v28 }
 0x33b   : > { %v1276_v55 = vmul.f32 0.6931472, %v2346_v15  ;;  %v2191_v37 = vpack.c.bf16 %v1303_v38, %v1301_v35  ;;  %v2348_v41 = vpop.eup %2347  ;;  %vm1290_vm12 = vcmp.lt.f32.partialorder %v1289_v62, 0.0004427343  ;;  %1762 = vmatprep.mubr.f32.mxu0 %v2439_v0 }
 0x33c   : > { %v1304_v52 = vadd.f32 %v1296_v36, %v1184_v46  ;;  %v1267_v4 = vmul.f32 0.6931472, %v2348_v41  ;;  %v1288_v7 = vmul.f32 %v2344_v13, %v1287_v59  ;;  %v1329_v13 = vpop.permute.xlu0 %1328  ;;  %v1334_v36 = vpop.permute.xlu1 %1333 }
 0x33d   : > { %v1282_v2 = vsel %vm1281_vm9, %v1279_v25, %v1276_v55  ;;  %2192 = vmatprep.subr.bf16.mxu1 %v2191_v37 }
 0x33e   : > { %v1298_v48 = vmul.f32 0.01, %v1282_v2  ;;  %2194 = vmatpush1.bf16.msra.mxu1 %v2193_v42  ;;  %v1273_v63 = vsel %vm1272_vm11, %v1270_v58, %v1267_v4 }
 0x33f   : > { %v1297_v33 = vmul.f32 0.01, %v1273_v63 }
 0x340   : > { %v1306_v56 = vadd.f32 %v1298_v48, %v1186_v47 }
 0x341   : > { %v1305_v17 = vadd.f32 %v1297_v33, %v1185_v31 }
 0x342   : > { %v2197_v57 = vpack.c.bf16 %v1306_v56, %v1304_v52 }
 0x344   : > { %v2350_v61 = vpop.eup %2349 }
 0x345   : > { %v1285_v1 = vmul.f32 0.6931472, %v2350_v61 }
 0x347   : > { %v1291_v5 = vsel %vm1290_vm12, %v1288_v7, %v1285_v1 }
 0x348   : > { %v1299_v12 = vmul.f32 0.01, %v1291_v5 }
 0x34a   : > { %v1307_v19 = vadd.f32 %v1299_v12, %v1187_v11 }
 0x34c   : > { %v2195_v20 = vpack.c.bf16 %v1307_v19, %v1305_v17 }
 0x34e   : > { %2196 = vmatprep.subr.bf16.mxu1 %v2195_v20 }
 0x34f   : > { %2198 = vmatpush1.bf16.msra.mxu1 %v2197_v57 }
 0x352   : > { %2153 = vmatmul.mubr.msk.f32.vlgmr.msra.gmra.mrb[16].mxu1 %vm821_vm10, %v1308_v39 }
 0x353   : > { %1418 = vmatprep.mubr.f32.mxu1 %v2439_v0 }
 0x356   : > { %2154 = vmatmul.mubr.msk.f32.gmra.mrb[18].mxu1 %vm821_vm10, %v1309_v9 }
 0x357   : > { %1424 = vmatprep.mubr.f32.mxu1 %v2439_v0 }
 0x35a   : > { %2155 = vmatmul.mubr.msk.f32.gmra.mrb[20].mxu1 %vm821_vm10, %v1310_v6 }
 0x35b   : > { %1430 = vmatprep.mubr.f32.mxu1 %v2439_v0 }
 0x35e   : > { %2156 = vmatmul.mubr.msk.f32.gmra.mrb[22].mxu1 %vm821_vm10, %v1311_v60 }
 0x35f   : > { %2017 = vmatprep.mubr.f32.mxu1 %v2439_v0 }
 0x425   : > { %v1414_v45 = vpop.f32.mrb[16].mxu1 }
 0x426   : > { %v2922_v18 = vadd.f32 %v1414_v45, %v1319_v24  ;;  %v1416_v26 = vpop.f32.mrb[17].mxu1 }
 0x427   : > { %v2924_v53 = vadd.f32 %v1416_v26, %v1319_v24 }
 0x428   : > { %v1445_v10 = vand.u32 2147483647, %v2922_v18 }
 0x429   : > { %v1446_v29 = vand.u32 2147483647, %v2924_v53  ;;  %v1420_v43 = vpop.f32.mrb[18].mxu1 }
 0x42a   : > { %v1453_v32 = vmul.f32 -100.0, %v1445_v10  ;;  %v2928_v8 = vadd.f32 %v1420_v43, %v1324_v27  ;;  %v1422_v16 = vpop.f32.mrb[19].mxu1 }
 0x42b   : > { %v1454_v34 = vmul.f32 -100.0, %v1446_v29  ;;  %v2930_v3 = vadd.f32 %v1422_v16, %v1324_v27 }
 0x42c   : > { %v1461_v21 = vmul.f32 1.442695, %v1453_v32  ;;  %v1447_v30 = vand.u32 2147483647, %v2928_v8 }
 0x42d   : > { %v1463_v35 = vmul.f32 1.442695, %v1454_v34  ;;  %v1448_v38 = vand.u32 2147483647, %v2930_v3  ;;  %v1426_v40 = vpop.f32.mrb[20].mxu1 }
 0x42e   : > { %2351 = vpow2.f32 %v1461_v21  ;;  %v1455_v15 = vmul.f32 -100.0, %v1447_v30  ;;  %v2934_v42 = vadd.f32 %v1426_v40, %v1329_v13  ;;  %v1428_v54 = vpop.f32.mrb[21].mxu1 }
 0x42f   : > { %2353 = vpow2.f32 %v1463_v35  ;;  %v1456_v44 = vmul.f32 -100.0, %v1448_v38  ;;  %v2936_v55 = vadd.f32 %v1428_v54, %v1329_v13 }
 0x430   : > { %v1465_v25 = vmul.f32 1.442695, %v1455_v15  ;;  %v1449_v37 = vand.u32 2147483647, %v2934_v42 }
 0x431   : > { %v1467_v2 = vmul.f32 1.442695, %v1456_v44  ;;  %v1450_v41 = vand.u32 2147483647, %v2936_v55  ;;  %v1432_v46 = vpop.f32.mrb[22].mxu1  ;;  %v1437_v44 = vmax.f32 %v2922_v18, 0.0 }
 0x432   : > { %2355 = vpow2.f32 %v1465_v25  ;;  %v1457_v47 = vmul.f32 -100.0, %v1449_v37  ;;  %v2940_v48 = vadd.f32 %v1432_v46, %v1334_v36  ;;  %v1434_v49 = vpop.f32.mrb[23].mxu1  ;;  %v1438_v18 = vmax.f32 %v2924_v53, 0.0 }
 0x433   : > { %2357 = vpow2.f32 %v1467_v2  ;;  %v1458_v51 = vmul.f32 -100.0, %v1450_v41  ;;  %v2943_v57 = vadd.f32 %v1434_v49, %v1334_v36 }
 0x434   : > { %v1469_v52 = vmul.f32 1.442695, %v1457_v47  ;;  %v1451_v50 = vand.u32 2147483647, %v2940_v48 }
 0x435   : > { %v1471_v56 = vmul.f32 1.442695, %v1458_v51  ;;  %v1452_v1 = vand.u32 2147483647, %v2943_v57 }
 0x436   : > { %2359 = vpow2.f32 %v1469_v52  ;;  %v1459_v4 = vmul.f32 -100.0, %v1451_v50 }
 0x437   : > { %2361 = vpow2.f32 %v1471_v56  ;;  %v1460_v17 = vmul.f32 -100.0, %v1452_v1 }
 0x438   : > { %v2352_v58 = vpop.eup %2351  ;;  %v1473_v59 = vmul.f32 1.442695, %v1459_v4 }
 0x439   : > { %v2354_v62 = vpop.eup %2353  ;;  %v1477_v63 = vadd.f32 1.0, %v2352_v58  ;;  %v1480_v5 = vmul.f32 -0.5, %v2352_v58  ;;  %v1483_v20 = vand.u32 2147483647, %v2352_v58  ;;  %v1475_v14 = vmul.f32 1.442695, %v1460_v17 }
 0x43a   : > { %v1486_v61 = vadd.f32 1.0, %v2354_v62  ;;  %2363 = vpow2.f32 %v1473_v59  ;;  %v1489_v11 = vmul.f32 -0.5, %v2354_v62  ;;  %v1492_v45 = vand.u32 2147483647, %v2354_v62 }
 0x43b   : > { %2365 = vlog2.f32 %v1477_v63  ;;  %v1481_v39 = vadd.f32 1.0, %v1480_v5  ;;  %vm2950_vm1 = vcmp.lt.f32.partialorder %v1483_v20, 0.0004427343  ;;  %v1439_v59 = vmax.f32 %v2928_v8, 0.0 }
 0x43c   : > { %v2356_v7 = vpop.eup %2355  ;;  %2367 = vlog2.f32 %v1486_v61  ;;  %v1490_v60 = vadd.f32 1.0, %v1489_v11  ;;  %vm2958_vm13 = vcmp.lt.f32.partialorder %v1492_v45, 0.0004427343  ;;  %v1440_v63 = vmax.f32 %v2930_v3, 0.0 }
 0x43d   : > { %v2358_v33 = vpop.eup %2357  ;;  %v1495_v31 = vadd.f32 1.0, %v2356_v7  ;;  %v1498_v9 = vmul.f32 -0.5, %v2356_v7  ;;  %v1482_v10 = vmul.f32 %v2352_v58, %v1481_v39  ;;  %v1501_v29 = vand.u32 2147483647, %v2356_v7 }
 0x43e   : > { %v1504_v12 = vadd.f32 1.0, %v2358_v33  ;;  %v1507_v23 = vmul.f32 -0.5, %v2358_v33  ;;  %v1491_v34 = vmul.f32 %v2354_v62, %v1490_v60  ;;  %v1510_v15 = vand.u32 2147483647, %v2358_v33 }
 0x43f   : > { %2369 = vlog2.f32 %v1495_v31  ;;  %v1499_v27 = vadd.f32 1.0, %v1498_v9  ;;  %vm2965_vm14 = vcmp.lt.f32.partialorder %v1501_v29, 0.0004427343 }
 0x440   : > { %v2360_v19 = vpop.eup %2359  ;;  %2371 = vlog2.f32 %v1504_v12  ;;  %v1508_v13 = vadd.f32 1.0, %v1507_v23  ;;  %vm1511_vm15 = vcmp.lt.f32.partialorder %v1510_v15, 0.0004427343 }
 0x441   : > { %v1513_v6 = vadd.f32 1.0, %v2360_v19  ;;  %v2946_v22 = vpop.eup %2361  ;;  %v1516_v21 = vmul.f32 -0.5, %v2360_v19  ;;  %v1500_v37 = vmul.f32 %v2356_v7, %v1499_v27  ;;  %v1519_v47 = vand.u32 2147483647, %v2360_v19 }
 0x442   : > { %v1522_v35 = vadd.f32 1.0, %v2946_v22  ;;  %v1509_v50 = vmul.f32 %v2358_v33, %v1508_v13  ;;  %v1525_v60 = vmul.f32 -0.5, %v2946_v22 }
 0x443   : > { %2373 = vlog2.f32 %v1513_v6  ;;  %v1517_v46 = vadd.f32 1.0, %v1516_v21  ;;  %vm1520_vm2 = vcmp.lt.f32.partialorder %v1519_v47, 0.0004427343  ;;  %v1790_v47 = vpop.permute.xlu0 %1789 }
 0x444   : > { %v2948_v28 = vpop.eup %2363  ;;  %2375 = vpow2.f32 %v1475_v14  ;;  %v1526_v29 = vadd.f32 1.0, %v1525_v60 }
 0x445   : > { %v2366_v26 = vpop.eup %2365  ;;  %v1531_v43 = vadd.f32 1.0, %v2948_v28  ;;  %v1534_v49 = vmul.f32 -0.5, %v2948_v28  ;;  %v1518_v5 = vmul.f32 %v2360_v19, %v1517_v46  ;;  %v1537_v53 = vand.u32 2147483647, %v2948_v28  ;;  %v1568_v46 = vld [vmem:[%s3088_s9 + $0x18] sm:$0xff] }
 0x446   : > { %v2368_v32 = vpop.eup %2367  ;;  %v1479_v16 = vmul.f32 0.6931472, %v2366_v26  ;;  %v1441_v26 = vmax.f32 %v2934_v42, 0.0 }
 0x447   : > { %v1488_v30 = vmul.f32 0.6931472, %v2368_v32  ;;  %2377 = vlog2.f32 %v1531_v43  ;;  %v1535_v31 = vadd.f32 1.0, %v1534_v49  ;;  %vm1538_vm3 = vcmp.lt.f32.partialorder %v1537_v53, 0.0004427343 }
 0x448   : > { %v1485_v38 = vsel %vm2950_vm1, %v1482_v10, %v1479_v16  ;;  %2379 = vlog2.f32 %v1522_v35  ;;  %v1443_v10 = vmax.f32 %v2940_v48, 0.0  ;;  %v1528_v16 = vand.u32 2147483647, %v2946_v22 }
 0x449   : > { %v2370_v54 = vpop.eup %2369  ;;  %v1494_v25 = vsel %vm2958_vm13, %v1491_v34, %v1488_v30  ;;  %v1549_v51 = vmul.f32 0.01, %v1485_v38  ;;  %v1536_v14 = vmul.f32 %v2948_v28, %v1535_v31  ;;  %v1527_v30 = vmul.f32 %v2946_v22, %v1526_v29 }
 0x44a   : > { %v2372_v2 = vpop.eup %2371  ;;  %v1497_v41 = vmul.f32 0.6931472, %v2370_v54  ;;  %v1550_v56 = vmul.f32 0.01, %v1494_v25  ;;  %vm1529_vm4 = vcmp.lt.f32.partialorder %v1528_v16, 0.0004427343 }
 0x44b   : > { %v1506_v52 = vmul.f32 0.6931472, %v2372_v2  ;;  %v1557_v33 = vadd.f32 %v1549_v51, %v1437_v44  ;;  %v1442_v44 = vmax.f32 %v2936_v55, 0.0  ;;  %v1444_v25 = vmax.f32 %v2943_v57, 0.0  ;;  %v1566_v55 = vld [vmem:[%s3088_s9 + $0x8] sm:$0xff]  ;;  %v1567_v57 = vld [vmem:[%s3088_s9 + $0x10] sm:$0xff] }
 0x44c   : > { %v1503_v4 = vsel %vm2965_vm14, %v1500_v37, %v1497_v41  ;;  %v1558_v17 = vadd.f32 %v1550_v56, %v1438_v18  ;;  %v1565_v41 = vld [vmem:[%s3088_s9] sm:$0xff]  ;;  %v1795_v56 = vpop.permute.xlu1 %1794 }
 0x44d   : > { %v2374_v58 = vpop.eup %2373  ;;  %v1551_v62 = vmul.f32 0.01, %v1503_v4  ;;  %v1512_v61 = vsel %vm1511_vm15, %v1509_v50, %v1506_v52 }
 0x44e   : > { %v1552_v1 = vmul.f32 0.01, %v1512_v61  ;;  %v1515_v7 = vmul.f32 0.6931472, %v2374_v58  ;;  %v2376_v12 = vpop.eup %2375 }
 0x44f   : > { %v1559_v11 = vadd.f32 %v1551_v62, %v1439_v59  ;;  %v1540_v8 = vadd.f32 1.0, %v2376_v12  ;;  %v1543_v43 = vmul.f32 -0.5, %v2376_v12  ;;  %v1546_v35 = vand.u32 2147483647, %v2376_v12 }
 0x450   : > { %v1560_v20 = vadd.f32 %v1552_v1, %v1440_v63  ;;  %v1521_v39 = vsel %vm1520_vm2, %v1518_v5, %v1515_v7  ;;  %v1800_v5 = vpop.permute.xlu0 %1799 }
 0x451   : > { %v2378_v9 = vpop.eup %2377  ;;  %v2201_v6 = vpack.c.bf16 %v1559_v11, %v1557_v33  ;;  %v1553_v19 = vmul.f32 0.01, %v1521_v39  ;;  %2381 = vlog2.f32 %v1540_v8  ;;  %v1544_v13 = vadd.f32 1.0, %v1543_v43  ;;  %v1805_v8 = vpop.permute.xlu1 %1804 }
 0x452   : > { %v1533_v3 = vmul.f32 0.6931472, %v2378_v9  ;;  %v2199_v23 = vpack.c.bf16 %v1560_v20, %v1558_v17  ;;  %v2380_v45 = vpop.eup %2379  ;;  %vm1547_vm0 = vcmp.lt.f32.partialorder %v1546_v35, 0.0004427343 }
 0x453   : > { %v1561_v32 = vadd.f32 %v1553_v19, %v1441_v26  ;;  %v1524_v28 = vmul.f32 0.6931472, %v2380_v45  ;;  %v1545_v15 = vmul.f32 %v2376_v12, %v1544_v13 }
 0x454   : > { %v1539_v24 = vsel %vm1538_vm3, %v1536_v14, %v1533_v3  ;;  %2200 = vmatprep.subr.bf16.mxu0 %v2199_v23 }
 0x455   : > { %v1555_v27 = vmul.f32 0.01, %v1539_v24  ;;  %2202 = vmatpush1.bf16.msra.mxu0 %v2201_v6  ;;  %v1530_v38 = vsel %vm1529_vm4, %v1527_v30, %v1524_v28 }
 0x456   : > { %v1554_v48 = vmul.f32 0.01, %v1530_v38 }
 0x457   : > { %v1563_v34 = vadd.f32 %v1555_v27, %v1443_v10 }
 0x458   : > { %v1562_v36 = vadd.f32 %v1554_v48, %v1442_v44 }
 0x459   : > { %v2206_v21 = vpack.c.bf16 %v1563_v34, %v1561_v32 }
 0x45b   : > { %v2382_v40 = vpop.eup %2381 }
 0x45c   : > { %v1542_v42 = vmul.f32 0.6931472, %v2382_v40 }
 0x45e   : > { %v1548_v54 = vsel %vm1547_vm0, %v1545_v15, %v1542_v42 }
 0x45f   : > { %v1556_v37 = vmul.f32 0.01, %v1548_v54 }
 0x461   : > { %v1564_v2 = vadd.f32 %v1556_v37, %v1444_v25 }
 0x463   : > { %v2203_v22 = vpack.c.bf16 %v1564_v2, %v1562_v36 }
 0x465   : > { %2205 = vmatprep.subr.msk.bf16.mxu0 %vm2204_vm7, %v2203_v22 }
 0x466   : > { %2208 = vmatpush1.bf16.msk.msra.mxu0 %vm2204_vm7, %v2206_v21 }
 0x469   : > { %2165 = vmatmul.mubr.msk.f32.vlgmr.msra.gmra.mrb[8].mxu0 %vm1678_vm8, %v1565_v41 }
 0x46a   : > { %1768 = vmatprep.mubr.f32.mxu0 %v2439_v0 }
 0x46d   : > { %2166 = vmatmul.mubr.msk.f32.gmra.mrb[10].mxu0 %vm1678_vm8, %v1566_v55 }
 0x46e   : > { %1774 = vmatprep.mubr.f32.mxu0 %v2439_v0 }
 0x471   : > { %2167 = vmatmul.mubr.msk.f32.gmra.mrb[12].mxu0 %vm1678_vm8, %v1567_v57 }
 0x472   : > { %1780 = vmatprep.mubr.f32.mxu0 %v2439_v0 }
 0x475   : > { %2168 = vmatmul.mubr.msk.f32.gmra.mrb[14].mxu0 %vm1678_vm8, %v1568_v46 }
 0x53c   : > { %v1764_v49 = vpop.f32.mrb[8].mxu0 }
 0x53d   : > { %v2999_v51 = vadd.f32 %v1790_v47, %v1764_v49  ;;  %v1766_v52 = vpop.f32.mrb[9].mxu0 }
 0x53e   : > { %v3001_v50 = vadd.f32 %v1790_v47, %v1766_v52 }
 0x53f   : > { %v1823_v18 = vand.u32 2147483647, %v2999_v51 }
 0x540   : > { %v1824_v4 = vand.u32 2147483647, %v3001_v50  ;;  %v1770_v58 = vpop.f32.mrb[10].mxu0 }
 0x541   : > { %v1831_v59 = vmul.f32 -100.0, %v1823_v18  ;;  %v3005_v0 = vadd.f32 %v1795_v56, %v1770_v58  ;;  %v1772_v62 = vpop.f32.mrb[11].mxu0 }
 0x542   : > { %v1832_v63 = vmul.f32 -100.0, %v1824_v4  ;;  %v3007_v61 = vadd.f32 %v1795_v56, %v1772_v62 }
 0x543   : > { %v1839_v1 = vmul.f32 1.442695, %v1831_v59  ;;  %v1825_v7 = vand.u32 2147483647, %v3005_v0 }
 0x544   : > { %v1841_v31 = vmul.f32 1.442695, %v1832_v63  ;;  %v1826_v33 = vand.u32 2147483647, %v3007_v61  ;;  %v1776_v11 = vpop.f32.mrb[12].mxu0 }
 0x545   : > { %2383 = vpow2.f32 %v1839_v1  ;;  %v1833_v53 = vmul.f32 -100.0, %v1825_v7  ;;  %v3011_v12 = vadd.f32 %v1800_v5, %v1776_v11  ;;  %v1778_v17 = vpop.f32.mrb[13].mxu0 }
 0x546   : > { %2385 = vpow2.f32 %v1841_v31  ;;  %v1834_v20 = vmul.f32 -100.0, %v1826_v33  ;;  %v3013_v39 = vadd.f32 %v1800_v5, %v1778_v17  ;;  %v1815_v17 = vmax.f32 %v2999_v51, 0.0 }
 0x547   : > { %v1843_v9 = vmul.f32 1.442695, %v1833_v53  ;;  %v1827_v6 = vand.u32 2147483647, %v3011_v12  ;;  %v1816_v51 = vmax.f32 %v3001_v50, 0.0 }
 0x548   : > { %v1845_v60 = vmul.f32 1.442695, %v1834_v20  ;;  %v1828_v3 = vand.u32 2147483647, %v3013_v39  ;;  %v1782_v14 = vpop.f32.mrb[14].mxu0 }
 0x549   : > { %2387 = vpow2.f32 %v1843_v9  ;;  %v1835_v23 = vmul.f32 -100.0, %v1827_v6  ;;  %v3017_v19 = vadd.f32 %v1805_v8, %v1782_v14  ;;  %v1784_v24 = vpop.f32.mrb[15].mxu0 }
 0x54a   : > { %2389 = vpow2.f32 %v1845_v60  ;;  %v1836_v45 = vmul.f32 -100.0, %v1828_v3  ;;  %v3020_v43 = vadd.f32 %v1805_v8, %v1784_v24 }
 0x54b   : > { %v1847_v26 = vmul.f32 1.442695, %v1835_v23  ;;  %v1829_v10 = vand.u32 2147483647, %v3017_v19 }
 0x54c   : > { %v1849_v27 = vmul.f32 1.442695, %v1836_v45  ;;  %v1830_v30 = vand.u32 2147483647, %v3020_v43 }
 0x54d   : > { %2391 = vpow2.f32 %v1847_v26  ;;  %v1837_v29 = vmul.f32 -100.0, %v1829_v10 }
 0x54e   : > { %2393 = vpow2.f32 %v1849_v27  ;;  %v1838_v48 = vmul.f32 -100.0, %v1830_v30 }
 0x54f   : > { %v2384_v32 = vpop.eup %2383  ;;  %v1851_v16 = vmul.f32 1.442695, %v1837_v29 }
 0x550   : > { %v2386_v34 = vpop.eup %2385  ;;  %v1855_v28 = vadd.f32 1.0, %v2384_v32  ;;  %v1858_v38 = vmul.f32 -0.5, %v2384_v32  ;;  %v1861_v44 = vand.u32 2147483647, %v2384_v32  ;;  %v1853_v22 = vmul.f32 1.442695, %v1838_v48 }
 0x551   : > { %v1864_v21 = vadd.f32 1.0, %v2386_v34  ;;  %2395 = vpow2.f32 %v1851_v16  ;;  %v1867_v42 = vmul.f32 -0.5, %v2386_v34  ;;  %v1870_v47 = vand.u32 2147483647, %v2386_v34 }
 0x552   : > { %2397 = vlog2.f32 %v1855_v28  ;;  %v1859_v25 = vadd.f32 1.0, %v1858_v38  ;;  %vm3027_vm9 = vcmp.lt.f32.partialorder %v1861_v44, 0.0004427343 }
 0x553   : > { %v2388_v13 = vpop.eup %2387  ;;  %2399 = vlog2.f32 %v1864_v21  ;;  %v1868_v2 = vadd.f32 1.0, %v1867_v42  ;;  %vm3035_vm11 = vcmp.lt.f32.partialorder %v1870_v47, 0.0004427343  ;;  %v1819_v47 = vmax.f32 %v3011_v12, 0.0 }
 0x554   : > { %v2390_v35 = vpop.eup %2389  ;;  %v1873_v40 = vadd.f32 1.0, %v2388_v13  ;;  %v1876_v37 = vmul.f32 -0.5, %v2388_v13  ;;  %v1860_v52 = vmul.f32 %v2384_v32, %v1859_v25  ;;  %v1879_v56 = vand.u32 2147483647, %v2388_v13 }
 0x555   : > { %v1882_v15 = vadd.f32 1.0, %v2390_v35  ;;  %v1885_v55 = vmul.f32 -0.5, %v2390_v35  ;;  %v1869_v62 = vmul.f32 %v2386_v34, %v1868_v2  ;;  %v1888_v11 = vand.u32 2147483647, %v2390_v35 }
 0x556   : > { %2401 = vlog2.f32 %v1873_v40  ;;  %v1877_v18 = vadd.f32 1.0, %v1876_v37  ;;  %vm3042_vm12 = vcmp.lt.f32.partialorder %v1879_v56, 0.0004427343  ;;  %v1817_v32 = vmax.f32 %v3005_v0, 0.0 }
 0x557   : > { %v2392_v54 = vpop.eup %2391  ;;  %2403 = vlog2.f32 %v1882_v15  ;;  %v1886_v7 = vadd.f32 1.0, %v1885_v55  ;;  %vm1889_vm1 = vcmp.lt.f32.partialorder %v1888_v11, 0.0004427343  ;;  %v1818_v34 = vmax.f32 %v3007_v61, 0.0 }
 0x558   : > { %v1891_v36 = vadd.f32 1.0, %v2392_v54  ;;  %v3023_v41 = vpop.eup %2393  ;;  %v1894_v63 = vmul.f32 -0.5, %v2392_v54  ;;  %v1878_v9 = vmul.f32 %v2388_v13, %v1877_v18  ;;  %v1897_v14 = vand.u32 2147483647, %v2392_v54 }
 0x559   : > { %v1900_v5 = vadd.f32 1.0, %v3023_v41  ;;  %v1887_v26 = vmul.f32 %v2390_v35, %v1886_v7 }
 0x55a   : > { %2405 = vlog2.f32 %v1891_v36  ;;  %v1895_v3 = vadd.f32 1.0, %v1894_v63  ;;  %vm1898_vm13 = vcmp.lt.f32.partialorder %v1897_v14, 0.0004427343  ;;  %v1903_v36 = vmul.f32 -0.5, %v3023_v41 }
 0x55b   : > { %v3025_v57 = vpop.eup %2395  ;;  %2407 = vpow2.f32 %v1853_v22 }
 0x55c   : > { %v2398_v49 = vpop.eup %2397  ;;  %v1909_v4 = vadd.f32 1.0, %v3025_v57  ;;  %v1912_v23 = vmul.f32 -0.5, %v3025_v57  ;;  %v1896_v13 = vmul.f32 %v2392_v54, %v1895_v3  ;;  %v1915_v50 = vand.u32 2147483647, %v3025_v57 }
 0x55d   : > { %v2400_v58 = vpop.eup %2399  ;;  %v1857_v59 = vmul.f32 0.6931472, %v2398_v49  ;;  %v1821_v49 = vmax.f32 %v3017_v19, 0.0  ;;  %v1904_v18 = vadd.f32 1.0, %v1903_v36 }
 0x55e   : > { %v1866_v1 = vmul.f32 0.6931472, %v2400_v58  ;;  %2409 = vlog2.f32 %v1909_v4  ;;  %v1913_v38 = vadd.f32 1.0, %v1912_v23  ;;  %vm1916_vm14 = vcmp.lt.f32.partialorder %v1915_v50, 0.0004427343 }
 0x55f   : > { %v1863_v31 = vsel %vm3027_vm9, %v1860_v52, %v1857_v59  ;;  %2411 = vlog2.f32 %v1900_v5  ;;  %v1906_v58 = vand.u32 2147483647, %v3023_v41  ;;  %v1905_v63 = vmul.f32 %v3023_v41, %v1904_v18  ;;  %v1943_v41 = vld [vmem:[%s3091_s12] sm:$0x7] }
 0x560   : > { %v2402_v53 = vpop.eup %2401  ;;  %v1872_v20 = vsel %vm3035_vm11, %v1869_v62, %v1866_v1  ;;  %v1927_v24 = vmul.f32 0.01, %v1863_v31  ;;  %v1914_v2 = vmul.f32 %v3025_v57, %v1913_v38 }
 0x561   : > { %v2404_v8 = vpop.eup %2403  ;;  %v1875_v60 = vmul.f32 0.6931472, %v2402_v53  ;;  %v1928_v10 = vmul.f32 0.01, %v1872_v20  ;;  %vm1907_vm15 = vcmp.lt.f32.partialorder %v1906_v58, 0.0004427343 }
 0x562   : > { %v1884_v45 = vmul.f32 0.6931472, %v2404_v8  ;;  %v1935_v35 = vadd.f32 %v1927_v24, %v1815_v17  ;;  %v1820_v53 = vmax.f32 %v3013_v39, 0.0  ;;  %v1822_v17 = vmax.f32 %v3020_v43, 0.0 }
 0x563   : > { %v1881_v27 = vsel %vm3042_vm12, %v1878_v9, %v1875_v60  ;;  %v1936_v15 = vadd.f32 %v1928_v10, %v1816_v51  ;;  %v1948_v60 = vpop.permute.xlu0 %1947 }
 0x564   : > { %v2406_v29 = vpop.eup %2405  ;;  %v1929_v16 = vmul.f32 0.01, %v1881_v27  ;;  %v1890_v28 = vsel %vm1889_vm1, %v1887_v26, %v1884_v45 }
 0x565   : > { %v1930_v21 = vmul.f32 0.01, %v1890_v28  ;;  %v1893_v30 = vmul.f32 0.6931472, %v2406_v29  ;;  %v2408_v42 = vpop.eup %2407 }
 0x566   : > { %v1937_v40 = vadd.f32 %v1929_v16, %v1817_v32  ;;  %v1918_v0 = vadd.f32 1.0, %v2408_v42  ;;  %v1921_v56 = vmul.f32 -0.5, %v2408_v42  ;;  %v1924_v7 = vand.u32 2147483647, %v2408_v42 }
 0x567   : > { %v1938_v48 = vadd.f32 %v1930_v21, %v1818_v34  ;;  %v1899_v44 = vsel %vm1898_vm13, %v1896_v13, %v1893_v30 }
 0x568   : > { %v2410_v25 = vpop.eup %2409  ;;  %v2211_v37 = vpack.c.bf16 %v1937_v40, %v1935_v35  ;;  %v1931_v54 = vmul.f32 0.01, %v1899_v44  ;;  %2413 = vlog2.f32 %v1918_v0  ;;  %v1922_v1 = vadd.f32 1.0, %v1921_v56 }
 0x569   : > { %v1911_v61 = vmul.f32 0.6931472, %v2410_v25  ;;  %v2209_v22 = vpack.c.bf16 %v1938_v48, %v1936_v15  ;;  %v2412_v46 = vpop.eup %2411  ;;  %vm1925_vm2 = vcmp.lt.f32.partialorder %v1924_v7, 0.0004427343 }
 0x56a   : > { %v1939_v4 = vadd.f32 %v1931_v54, %v1819_v47  ;;  %v1902_v57 = vmul.f32 0.6931472, %v2412_v46  ;;  %v1923_v33 = vmul.f32 %v2408_v42, %v1922_v1 }
 0x56b   : > { %v1917_v55 = vsel %vm1916_vm14, %v1914_v2, %v1911_v61  ;;  %2210 = vmatprep.subr.bf16.mxu1 %v2209_v22 }
 0x56c   : > { %v1933_v52 = vmul.f32 0.01, %v1917_v55  ;;  %2212 = vmatpush1.bf16.msra.mxu1 %v2211_v37  ;;  %v1908_v5 = vsel %vm1907_vm15, %v1905_v63, %v1902_v57 }
 0x56d   : > { %v1932_v19 = vmul.f32 0.01, %v1908_v5 }
 0x56e   : > { %v1941_v59 = vadd.f32 %v1933_v52, %v1821_v49 }
 0x56f   : > { %v1940_v9 = vadd.f32 %v1932_v19, %v1820_v53 }
 0x570   : > { %v2215_v62 = vpack.c.bf16 %v1941_v59, %v1939_v4 }
 0x572   : > { %v2414_v31 = vpop.eup %2413 }
 0x573   : > { %v1920_v12 = vmul.f32 0.6931472, %v2414_v31 }
 0x575   : > { %v1926_v11 = vsel %vm1925_vm2, %v1923_v33, %v1920_v12 }
 0x576   : > { %v1934_v20 = vmul.f32 0.01, %v1926_v11 }
 0x578   : > { %v1942_v6 = vadd.f32 %v1934_v20, %v1822_v17 }
 0x57a   : > { %v2213_v8 = vpack.c.bf16 %v1942_v6, %v1940_v9 }
 0x57c   : > { %2214 = vmatprep.subr.bf16.mxu1 %v2213_v8 }
 0x57d   : > { %2216 = vmatpush1.bf16.msra.mxu1 %v2215_v62 }
 0x580   : > { %2169 = vmatmul.mubr.msk.f32.vlgmr.msra.gmra.mrb[24].mxu1 %vm821_vm10, %v1943_v41 }
 0x653   : > { %v2019_v3 = vpop.f32.mrb[24].mxu1 }
 0x654   : > { %v2020_v14 = vadd.f32 %v2019_v3, %v1948_v60  ;;  %v2021_v23 = vpop.f32.mrb[25].mxu1 }
 0x655   : > { %v2022_v24 = vadd.f32 %v2021_v23, %v1948_v60 }
 0x657   : > { %v2026_v39 = vcombine.low %v2020_v14, %v2022_v24 }
 0x659   : > { %2028 = vst [vmem:[%s525_s23] sm:$0x77] %v2026_v39 }
 0x65a PF: > { %s24_s15 = sadd.s32 1, %s2437_s15   ;;  %s3130_s29 = smov %s2433_s30 }
 0x65b   : > { %p21_p5 = scmp.ge.s32.totalorder %s24_s15, 4   ;;  %s3131_s30 = smov %s3133_s16 }
 0x65d   :  { %23 = sbr.rel (!%p21_p5) target bundleno = 2 (0x2), region = 109 }

</bundles_post_ra>
